<compile_context>
chip_gen: v7x
topology: tpu7x:2x2x1
jax: 0.10.0
libtpu: 0.0.40
codegen_flags: <defaults>
</compile_context>

<pallas_src>
import math

import jax
import jax.numpy as jnp
from jax import lax
from jax.experimental import pallas as pl
from jax.experimental.pallas import tpu as pltpu

# ---------------- config (small, consistent with the module) ----------------
D_MODEL = 32
NUM_HEADS = 4
HEAD_DIM = D_MODEL // NUM_HEADS
SEQLEN = 16
BATCH = 2
D_FF = 64
DILATION = 1            # ConvLayer path (dilation > 0 in the reference ctor)
TISA_NUM_KERNELS = 8
LN_EPS = 1e-5           # nn.LayerNorm default
_SCALE = 1.0 / math.sqrt(HEAD_DIM)


# ---------------- the single fused kernel ----------------
def _fused_block_kernel(x_ref, w_in_ref, bias_ref, w1_ref, w2_ref,
                        ng_ref, nb_ref, n2g_ref, n2b_ref, n1g_ref, n1b_ref,
                        o_ref):
    f32, bf16 = jnp.float32, jnp.bfloat16
    D, DFF, H, HD, L = D_MODEL, D_FF, NUM_HEADS, HEAD_DIM, SEQLEN

    x = x_ref[0].astype(f32)      # (L, D)   one batch element per grid step
    w_in = w_in_ref[...]          # (D, 3D)  bf16
    w1 = w1_ref[...]              # (3D, DFF) bf16, conv1 taps stacked on rows
    w2 = w2_ref[...]              # (3DFF, D) bf16, conv2 taps stacked on rows

    def layer_norm(h, g_ref, b_ref):
        mu = jnp.mean(h, axis=-1, keepdims=True)
        var = jnp.mean(jnp.square(h - mu), axis=-1, keepdims=True)
        return (h - mu) * lax.rsqrt(var + LN_EPS) * g_ref[...] + b_ref[...]

    def attention(h):
        # in_proj: (L, D) @ (D, 3D) -> (L, 3D); columns laid out [k | v | q]
        # exactly as the reference split (memory = first 2d cols, query = last d).
        proj = jnp.dot(h.astype(bf16), w_in, preferred_element_type=f32)
        heads = []
        for hh in range(H):                       # static unroll; head = lane slice
            kh = proj[:, hh * HD:(hh + 1) * HD].astype(bf16)
            vh = proj[:, D + hh * HD:D + (hh + 1) * HD].astype(bf16)
            qh = proj[:, 2 * D + hh * HD:2 * D + (hh + 1) * HD].astype(bf16)
            s = lax.dot_general(qh, kh, (((1,), (1,)), ((), ())),
                                preferred_element_type=f32) * _SCALE
            s = s + bias_ref[hh]                  # additive TISA relative bias
            m = jnp.max(s, axis=-1, keepdims=True)
            p = jnp.exp(s - m)
            denom = jnp.sum(p, axis=-1, keepdims=True)
            oh = jnp.dot(p.astype(bf16), vh, preferred_element_type=f32)
            heads.append(oh / denom)
        # `gated_attention` attr is never set in the reference, so the gate
        # Linear is dead code and the attention output is returned directly.
        return jnp.concatenate(heads, axis=-1)    # (L, D)

    # One-off (L, L) shift operators from 2-D iotas (MXU-friendly, avoids any
    # unaligned sublane concatenation):  s_prev @ h -> h[t-1],  s_next @ h -> h[t+1],
    # with implicit zero padding at the sequence boundaries.
    row = lax.broadcasted_iota(jnp.int32, (L, L), 0)
    col = lax.broadcasted_iota(jnp.int32, (L, L), 1)
    s_prev = jnp.where(row == col + 1, 1.0, 0.0).astype(bf16)
    s_next = jnp.where(col == row + 1, 1.0, 0.0).astype(bf16)

    def conv3(h, w, cin):
        # Conv1d(kernel=3, padding=DILATION=1, dilation=1, bias=False) as three
        # shifted matmuls; w rows are stacked taps [W[:,:,0].T ; W[:,:,1].T ; W[:,:,2].T].
        hb = h.astype(bf16)
        prev = jnp.dot(s_prev, hb, preferred_element_type=f32).astype(bf16)
        nxt = jnp.dot(s_next, hb, preferred_element_type=f32).astype(bf16)
        return (jnp.dot(prev, w[:cin], preferred_element_type=f32)
                + jnp.dot(hb, w[cin:2 * cin], preferred_element_type=f32)
                + jnp.dot(nxt, w[2 * cin:], preferred_element_type=f32))

    def conv_ff(h):
        # ConvLayer: conv_1 -> ReLU -> dropout(0)=id -> conv_2 (NCL permutes absorbed).
        h1 = jnp.maximum(conv3(h, w1, D), 0.0)    # (L, DFF)
        return conv3(h1, w2, DFF)                 # (L, D)

    # --- AttentionBlock.forward, use_preln=False, drop_prob=0 ---
    h = layer_norm(x, ng_ref, nb_ref)             # self.norm
    h = attention(h)                              # self.attn
    # TODO(synk): reference calls self.dropout / self.norm_1 / self.norm_2 which
    # are not defined in __init__; dropout(p=0) is identity and norm_1 / norm_2
    # are treated as standard LayerNorm(d_model) with default init.
    h = attention(h) + h                          # dropout_1(attn(h)) + h
    h = layer_norm(h, n2g_ref, n2b_ref)           # norm_2
    h = conv_ff(h) + h                            # dropout_2(ff(h)) + h
    h = layer_norm(h, n1g_ref, n1b_ref)           # norm_1
    o_ref[0] = h.astype(o_ref.dtype)


# ---------------- parameters (deterministic, PyTorch-style init) ----------------
def init_params(key):
    keys = jax.random.split(key, 6)
    d = D_MODEL

    def uniform(k, shape, fan_in):
        bound = 1.0 / math.sqrt(fan_in)
        return jax.random.uniform(k, shape, jnp.float32, -bound, bound)

    return {
        # nn.Linear(d_model, 3*d_model, bias=False)
        "in_proj_w": uniform(keys[0], (3 * d, d), d),
        # nn.Conv1d(d_model, d_ff, 3, bias=False) / nn.Conv1d(d_ff, d_model, 3, bias=False)
        "conv1_w": uniform(keys[1], (D_FF, d, 3), d * 3),
        "conv2_w": uniform(keys[2], (d, D_FF, 3), D_FF * 3),
        # nn.LayerNorm(d_model) defaults
        "norm_g": jnp.ones((d,), jnp.float32), "norm_b": jnp.zeros((d,), jnp.float32),
        "norm1_g": jnp.ones((d,), jnp.float32), "norm1_b": jnp.zeros((d,), jnp.float32),
        "norm2_g": jnp.ones((d,), jnp.float32), "norm2_b": jnp.zeros((d,), jnp.float32),
        # TODO(synk): the Tisa class source was not provided; these parameterize a
        # deterministic RBF positional scorer (output (H, L, L)) standing in for
        # the reference implementation/initialization.
        "tisa_amp": 0.1 * jax.random.normal(keys[3], (NUM_HEADS, TISA_NUM_KERNELS), jnp.float32),
        "tisa_center": jax.random.uniform(keys[4], (NUM_HEADS, TISA_NUM_KERNELS), jnp.float32,
                                          -float(SEQLEN // 2), float(SEQLEN // 2)),
        "tisa_sharp": jax.random.uniform(keys[5], (NUM_HEADS, TISA_NUM_KERNELS), jnp.float32,
                                         0.01, 0.2),
    }


def tisa_bias(params, L):
    rel = (jnp.arange(L)[None, :] - jnp.arange(L)[:, None]).astype(jnp.float32)  # j - i
    rel = rel[None, None]                                       # (1, 1, L, L)
    amp = params["tisa_amp"][:, :, None, None]
    cen = params["tisa_center"][:, :, None, None]
    shp = jnp.abs(params["tisa_sharp"])[:, :, None, None]
    return jnp.sum(amp * jnp.exp(-shp * jnp.square(rel - cen)), axis=1)   # (H, L, L)


def prepare_inputs(params, L):
    """Input-independent preprocessing hoisted out of the jitted forward:
    weight re-layout, bf16 cast of MXU operands, and the fixed-L TISA bias."""
    d = D_MODEL
    return {
        "w_in": params["in_proj_w"].T.astype(jnp.bfloat16),                              # (D, 3D)
        "w1": jnp.transpose(params["conv1_w"], (2, 1, 0)).reshape(3 * d, D_FF).astype(jnp.bfloat16),
        "w2": jnp.transpose(params["conv2_w"], (2, 1, 0)).reshape(3 * D_FF, d).astype(jnp.bfloat16),
        "bias": tisa_bias(params, L).astype(jnp.float32),                                # (H, L, L)
        "norm_g": params["norm_g"].reshape(1, d), "norm_b": params["norm_b"].reshape(1, d),
        "norm1_g": params["norm1_g"].reshape(1, d), "norm1_b": params["norm1_b"].reshape(1, d),
        "norm2_g": params["norm2_g"].reshape(1, d), "norm2_b": params["norm2_b"].reshape(1, d),
    }


# ---------------- module forward: one fused pallas_call ----------------
def attention_block_forward(prep, x, c=None):
    """AttentionBlock.forward(x, c); `c` is accepted but unused, as in the reference."""
    del c
    B, L, d = x.shape
    return pl.pallas_call(
        _fused_block_kernel,
        out_shape=jax.ShapeDtypeStruct((B, L, d), jnp.float32),
        grid=(B,),
        in_specs=[
            pl.BlockSpec((1, L, d), lambda b: (b, 0, 0)),              # x (one batch / step)
            pl.BlockSpec((d, 3 * d), lambda b: (0, 0)),                # in_proj weight (bf16)
            pl.BlockSpec((NUM_HEADS, L, L), lambda b: (0, 0, 0)),      # TISA additive bias
            pl.BlockSpec((3 * d, D_FF), lambda b: (0, 0)),             # conv1 taps (bf16)
            pl.BlockSpec((3 * D_FF, d), lambda b: (0, 0)),             # conv2 taps (bf16)
        ] + [pl.BlockSpec((1, d), lambda b: (0, 0))] * 6,              # LN gammas / betas
        out_specs=pl.BlockSpec((1, L, d), lambda b: (b, 0, 0)),
        compiler_params=pltpu.CompilerParams(
            dimension_semantics=("parallel",)),
    )(x, prep["w_in"], prep["bias"], prep["w1"], prep["w2"],
      prep["norm_g"], prep["norm_b"], prep["norm2_g"], prep["norm2_b"],
      prep["norm1_g"], prep["norm1_b"])


if __name__ == "__main__":
    key = jax.random.PRNGKey(0)
    kx, kc, kp = jax.random.split(key, 3)
    params = init_params(kp)
    prep = prepare_inputs(params, SEQLEN)   # hoisted out of the per-call jit
    x = jax.random.normal(kx, (BATCH, SEQLEN, D_MODEL), jnp.float32)
    c = jax.random.normal(kc, (BATCH, SEQLEN, D_MODEL), jnp.float32)  # unused, matches signature

    fwd = jax.jit(attention_block_forward)
    out = fwd(prep, x, c)
    jax.block_until_ready(out)
    assert out.shape == (BATCH, SEQLEN, D_MODEL)
    assert bool(jnp.all(jnp.isfinite(out)))
    print("KERNEL_OK")
</pallas_src>

<mosaic_0001>
module attributes {stable_mosaic.version = 11 : i64} {
  func.func @_fused_block_kernel(%arg0: i32, %arg1: memref<1x16x32xf32, #tpu.memory_space<vmem>>, %arg2: memref<32x96xbf16, #tpu.memory_space<vmem>>, %arg3: memref<4x16x16xf32, #tpu.memory_space<vmem>>, %arg4: memref<96x64xbf16, #tpu.memory_space<vmem>>, %arg5: memref<192x32xbf16, #tpu.memory_space<vmem>>, %arg6: memref<1x32xf32, #tpu.memory_space<vmem>>, %arg7: memref<1x32xf32, #tpu.memory_space<vmem>>, %arg8: memref<1x32xf32, #tpu.memory_space<vmem>>, %arg9: memref<1x32xf32, #tpu.memory_space<vmem>>, %arg10: memref<1x32xf32, #tpu.memory_space<vmem>>, %arg11: memref<1x32xf32, #tpu.memory_space<vmem>>, %arg12: memref<1x16x32xf32, #tpu.memory_space<vmem>>) attributes {dimension_semantics = [#tpu.dimension_semantics<parallel>], iteration_bounds = array<i64: 2>, scalar_prefetch = 0 : i64, scratch_operands = 0 : i64, tpu.core_type = #tpu.core_type<tc>, window_params = [{transform_indices = @transform_0, window_bounds = array<i64: 1, 16, 32>}, {pipeline_mode = #tpu.pipeline_mode<synchronous>, transform_indices = @transform_1, window_bounds = array<i64: 32, 96>}, {pipeline_mode = #tpu.pipeline_mode<synchronous>, transform_indices = @transform_2, window_bounds = array<i64: 4, 16, 16>}, {pipeline_mode = #tpu.pipeline_mode<synchronous>, transform_indices = @transform_3, window_bounds = array<i64: 96, 64>}, {pipeline_mode = #tpu.pipeline_mode<synchronous>, transform_indices = @transform_4, window_bounds = array<i64: 192, 32>}, {pipeline_mode = #tpu.pipeline_mode<synchronous>, transform_indices = @transform_5, window_bounds = array<i64: 1, 32>}, {pipeline_mode = #tpu.pipeline_mode<synchronous>, transform_indices = @transform_6, window_bounds = array<i64: 1, 32>}, {pipeline_mode = #tpu.pipeline_mode<synchronous>, transform_indices = @transform_7, window_bounds = array<i64: 1, 32>}, {pipeline_mode = #tpu.pipeline_mode<synchronous>, transform_indices = @transform_8, window_bounds = array<i64: 1, 32>}, {pipeline_mode = #tpu.pipeline_mode<synchronous>, transform_indices = @transform_9, window_bounds = array<i64: 1, 32>}, {pipeline_mode = #tpu.pipeline_mode<synchronous>, transform_indices = @transform_10, window_bounds = array<i64: 1, 32>}, {transform_indices = @transform_11, window_bounds = array<i64: 1, 16, 32>}]} {
    %c0 = arith.constant 0 : index
    %c0_0 = arith.constant 0 : index
    %c0_1 = arith.constant 0 : index
    %0 = vector.load %arg1[%c0, %c0_0, %c0_1] : memref<1x16x32xf32, #tpu.memory_space<vmem>>, vector<1x16x32xf32>
    %1 = vector.shape_cast %0 : vector<1x16x32xf32> to vector<16x32xf32>
    %c0_2 = arith.constant 0 : index
    %c0_3 = arith.constant 0 : index
    %2 = vector.load %arg2[%c0_2, %c0_3] : memref<32x96xbf16, #tpu.memory_space<vmem>>, vector<32x96xbf16>
    %c0_4 = arith.constant 0 : index
    %c0_5 = arith.constant 0 : index
    %3 = vector.load %arg4[%c0_4, %c0_5] : memref<96x64xbf16, #tpu.memory_space<vmem>>, vector<96x64xbf16>
    %c0_6 = arith.constant 0 : index
    %c0_7 = arith.constant 0 : index
    %4 = vector.load %arg5[%c0_6, %c0_7] : memref<192x32xbf16, #tpu.memory_space<vmem>>, vector<192x32xbf16>
    %5 = tpu.iota {dimensions = array<i32: 0>} : vector<16x16xi32>
    %6 = tpu.iota {dimensions = array<i32: 1>} : vector<16x16xi32>
    %c1_i32 = arith.constant 1 : i32
    %7 = vector.broadcast %c1_i32 : i32 to vector<16x16xi32>
    %8 = arith.addi %6, %7 : vector<16x16xi32>
    %9 = arith.cmpi eq, %5, %8 : vector<16x16xi32>
    %cst = arith.constant 1.000000e+00 : f32
    %cst_8 = arith.constant 0.000000e+00 : f32
    %10 = vector.broadcast %cst : f32 to vector<16x16xf32>
    %11 = vector.broadcast %cst_8 : f32 to vector<16x16xf32>
    %12 = arith.select %9, %10, %11 : vector<16x16xi1>, vector<16x16xf32>
    %13 = arith.truncf %12 : vector<16x16xf32> to vector<16x16xbf16>
    %c1_i32_9 = arith.constant 1 : i32
    %14 = vector.broadcast %c1_i32_9 : i32 to vector<16x16xi32>
    %15 = arith.addi %5, %14 : vector<16x16xi32>
    %16 = arith.cmpi eq, %6, %15 : vector<16x16xi32>
    %cst_10 = arith.constant 1.000000e+00 : f32
    %cst_11 = arith.constant 0.000000e+00 : f32
    %17 = vector.broadcast %cst_10 : f32 to vector<16x16xf32>
    %18 = vector.broadcast %cst_11 : f32 to vector<16x16xf32>
    %19 = arith.select %16, %17, %18 : vector<16x16xi1>, vector<16x16xf32>
    %20 = arith.truncf %19 : vector<16x16xf32> to vector<16x16xbf16>
    %cst_12 = arith.constant dense<0.000000e+00> : vector<16xf32>
    %21 = vector.multi_reduction <add>, %1, %cst_12 [1] : vector<16x32xf32> to vector<16xf32>
    %22 = vector.shape_cast %21 : vector<16xf32> to vector<16x1xf32>
    %cst_13 = arith.constant 3.200000e+01 : f32
    %23 = vector.broadcast %cst_13 : f32 to vector<16x1xf32>
    %24 = arith.divf %22, %23 : vector<16x1xf32>
    %25 = vector.broadcast %24 : vector<16x1xf32> to vector<16x32xf32>
    %26 = arith.subf %1, %25 : vector<16x32xf32>
    %27 = arith.mulf %26, %26 : vector<16x32xf32>
    %cst_14 = arith.constant dense<0.000000e+00> : vector<16xf32>
    %28 = vector.multi_reduction <add>, %27, %cst_14 [1] : vector<16x32xf32> to vector<16xf32>
    %29 = vector.shape_cast %28 : vector<16xf32> to vector<16x1xf32>
    %cst_15 = arith.constant 3.200000e+01 : f32
    %30 = vector.broadcast %cst_15 : f32 to vector<16x1xf32>
    %31 = arith.divf %29, %30 : vector<16x1xf32>
    %32 = vector.broadcast %24 : vector<16x1xf32> to vector<16x32xf32>
    %33 = arith.subf %1, %32 : vector<16x32xf32>
    %cst_16 = arith.constant 9.99999974E-6 : f32
    %34 = vector.broadcast %cst_16 : f32 to vector<16x1xf32>
    %35 = arith.addf %31, %34 : vector<16x1xf32>
    %36 = math.rsqrt %35 : vector<16x1xf32>
    %37 = vector.broadcast %36 : vector<16x1xf32> to vector<16x32xf32>
    %38 = arith.mulf %33, %37 : vector<16x32xf32>
    %c0_17 = arith.constant 0 : index
    %c0_18 = arith.constant 0 : index
    %39 = vector.load %arg6[%c0_17, %c0_18] : memref<1x32xf32, #tpu.memory_space<vmem>>, vector<1x32xf32>
    %40 = vector.broadcast %39 : vector<1x32xf32> to vector<16x32xf32>
    %41 = arith.mulf %38, %40 : vector<16x32xf32>
    %c0_19 = arith.constant 0 : index
    %c0_20 = arith.constant 0 : index
    %42 = vector.load %arg7[%c0_19, %c0_20] : memref<1x32xf32, #tpu.memory_space<vmem>>, vector<1x32xf32>
    %43 = vector.broadcast %42 : vector<1x32xf32> to vector<16x32xf32>
    %44 = arith.addf %41, %43 : vector<16x32xf32>
    %45 = arith.truncf %44 : vector<16x32xf32> to vector<16x32xbf16>
    %cst_21 = arith.constant dense<0.000000e+00> : vector<16x96xf32>
    %46 = tpu.matmul %45, %2, %cst_21 {dimension_numbers = #tpu.dot_dimension_numbers<[1], [0], [0], [1], [0, 0, 1, 1], [], []>} : vector<16x32xbf16>, vector<32x96xbf16>, vector<16x96xf32> -> vector<16x96xf32>
    %47 = vector.extract_strided_slice %46 {offsets = [0, 0], sizes = [16, 8], strides = [1, 1]} : vector<16x96xf32> to vector<16x8xf32>
    %48 = arith.truncf %47 : vector<16x8xf32> to vector<16x8xbf16>
    %49 = vector.extract_strided_slice %46 {offsets = [0, 32], sizes = [16, 8], strides = [1, 1]} : vector<16x96xf32> to vector<16x8xf32>
    %50 = arith.truncf %49 : vector<16x8xf32> to vector<16x8xbf16>
    %51 = vector.extract_strided_slice %46 {offsets = [0, 64], sizes = [16, 8], strides = [1, 1]} : vector<16x96xf32> to vector<16x8xf32>
    %52 = arith.truncf %51 : vector<16x8xf32> to vector<16x8xbf16>
    %cst_22 = arith.constant dense<0.000000e+00> : vector<16x16xf32>
    %53 = tpu.matmul %52, %48, %cst_22 {dimension_numbers = #tpu.dot_dimension_numbers<[1], [1], [0], [0], [0, 0, 1, 0], [], []>} : vector<16x8xbf16>, vector<16x8xbf16>, vector<16x16xf32> -> vector<16x16xf32>
    %cst_23 = arith.constant 0.353553385 : f32
    %54 = vector.broadcast %cst_23 : f32 to vector<16x16xf32>
    %55 = arith.mulf %53, %54 : vector<16x16xf32>
    %c0_24 = arith.constant 0 : index
    %c0_25 = arith.constant 0 : index
    %c0_26 = arith.constant 0 : index
    %56 = vector.load %arg3[%c0_24, %c0_25, %c0_26] : memref<4x16x16xf32, #tpu.memory_space<vmem>>, vector<1x16x16xf32>
    %57 = vector.shape_cast %56 : vector<1x16x16xf32> to vector<16x16xf32>
    %58 = arith.addf %55, %57 : vector<16x16xf32>
    %cst_27 = arith.constant dense<0xFF800000> : vector<16xf32>
    %59 = vector.multi_reduction <maximumf>, %58, %cst_27 [1] : vector<16x16xf32> to vector<16xf32>
    %60 = vector.shape_cast %59 : vector<16xf32> to vector<16x1xf32>
    %61 = vector.broadcast %60 : vector<16x1xf32> to vector<16x16xf32>
    %62 = arith.subf %58, %61 : vector<16x16xf32>
    %63 = math.exp %62 : vector<16x16xf32>
    %cst_28 = arith.constant dense<0.000000e+00> : vector<16xf32>
    %64 = vector.multi_reduction <add>, %63, %cst_28 [1] : vector<16x16xf32> to vector<16xf32>
    %65 = vector.shape_cast %64 : vector<16xf32> to vector<16x1xf32>
    %66 = arith.truncf %63 : vector<16x16xf32> to vector<16x16xbf16>
    %cst_29 = arith.constant dense<0.000000e+00> : vector<16x8xf32>
    %67 = tpu.matmul %66, %50, %cst_29 {dimension_numbers = #tpu.dot_dimension_numbers<[1], [0], [0], [1], [0, 0, 1, 1], [], []>} : vector<16x16xbf16>, vector<16x8xbf16>, vector<16x8xf32> -> vector<16x8xf32>
    %68 = vector.broadcast %65 : vector<16x1xf32> to vector<16x8xf32>
    %69 = arith.divf %67, %68 : vector<16x8xf32>
    %70 = vector.extract_strided_slice %46 {offsets = [0, 8], sizes = [16, 8], strides = [1, 1]} : vector<16x96xf32> to vector<16x8xf32>
    %71 = arith.truncf %70 : vector<16x8xf32> to vector<16x8xbf16>
    %72 = vector.extract_strided_slice %46 {offsets = [0, 40], sizes = [16, 8], strides = [1, 1]} : vector<16x96xf32> to vector<16x8xf32>
    %73 = arith.truncf %72 : vector<16x8xf32> to vector<16x8xbf16>
    %74 = vector.extract_strided_slice %46 {offsets = [0, 72], sizes = [16, 8], strides = [1, 1]} : vector<16x96xf32> to vector<16x8xf32>
    %75 = arith.truncf %74 : vector<16x8xf32> to vector<16x8xbf16>
    %cst_30 = arith.constant dense<0.000000e+00> : vector<16x16xf32>
    %76 = tpu.matmul %75, %71, %cst_30 {dimension_numbers = #tpu.dot_dimension_numbers<[1], [1], [0], [0], [0, 0, 1, 0], [], []>} : vector<16x8xbf16>, vector<16x8xbf16>, vector<16x16xf32> -> vector<16x16xf32>
    %cst_31 = arith.constant 0.353553385 : f32
    %77 = vector.broadcast %cst_31 : f32 to vector<16x16xf32>
    %78 = arith.mulf %76, %77 : vector<16x16xf32>
    %c1 = arith.constant 1 : index
    %c0_32 = arith.constant 0 : index
    %c0_33 = arith.constant 0 : index
    %79 = vector.load %arg3[%c1, %c0_32, %c0_33] : memref<4x16x16xf32, #tpu.memory_space<vmem>>, vector<1x16x16xf32>
    %80 = vector.shape_cast %79 : vector<1x16x16xf32> to vector<16x16xf32>
    %81 = arith.addf %78, %80 : vector<16x16xf32>
    %cst_34 = arith.constant dense<0xFF800000> : vector<16xf32>
    %82 = vector.multi_reduction <maximumf>, %81, %cst_34 [1] : vector<16x16xf32> to vector<16xf32>
    %83 = vector.shape_cast %82 : vector<16xf32> to vector<16x1xf32>
    %84 = vector.broadcast %83 : vector<16x1xf32> to vector<16x16xf32>
    %85 = arith.subf %81, %84 : vector<16x16xf32>
    %86 = math.exp %85 : vector<16x16xf32>
    %cst_35 = arith.constant dense<0.000000e+00> : vector<16xf32>
    %87 = vector.multi_reduction <add>, %86, %cst_35 [1] : vector<16x16xf32> to vector<16xf32>
    %88 = vector.shape_cast %87 : vector<16xf32> to vector<16x1xf32>
    %89 = arith.truncf %86 : vector<16x16xf32> to vector<16x16xbf16>
    %cst_36 = arith.constant dense<0.000000e+00> : vector<16x8xf32>
    %90 = tpu.matmul %89, %73, %cst_36 {dimension_numbers = #tpu.dot_dimension_numbers<[1], [0], [0], [1], [0, 0, 1, 1], [], []>} : vector<16x16xbf16>, vector<16x8xbf16>, vector<16x8xf32> -> vector<16x8xf32>
    %91 = vector.broadcast %88 : vector<16x1xf32> to vector<16x8xf32>
    %92 = arith.divf %90, %91 : vector<16x8xf32>
    %93 = vector.extract_strided_slice %46 {offsets = [0, 16], sizes = [16, 8], strides = [1, 1]} : vector<16x96xf32> to vector<16x8xf32>
    %94 = arith.truncf %93 : vector<16x8xf32> to vector<16x8xbf16>
    %95 = vector.extract_strided_slice %46 {offsets = [0, 48], sizes = [16, 8], strides = [1, 1]} : vector<16x96xf32> to vector<16x8xf32>
    %96 = arith.truncf %95 : vector<16x8xf32> to vector<16x8xbf16>
    %97 = vector.extract_strided_slice %46 {offsets = [0, 80], sizes = [16, 8], strides = [1, 1]} : vector<16x96xf32> to vector<16x8xf32>
    %98 = arith.truncf %97 : vector<16x8xf32> to vector<16x8xbf16>
    %cst_37 = arith.constant dense<0.000000e+00> : vector<16x16xf32>
    %99 = tpu.matmul %98, %94, %cst_37 {dimension_numbers = #tpu.dot_dimension_numbers<[1], [1], [0], [0], [0, 0, 1, 0], [], []>} : vector<16x8xbf16>, vector<16x8xbf16>, vector<16x16xf32> -> vector<16x16xf32>
    %cst_38 = arith.constant 0.353553385 : f32
    %100 = vector.broadcast %cst_38 : f32 to vector<16x16xf32>
    %101 = arith.mulf %99, %100 : vector<16x16xf32>
    %c2 = arith.constant 2 : index
    %c0_39 = arith.constant 0 : index
    %c0_40 = arith.constant 0 : index
    %102 = vector.load %arg3[%c2, %c0_39, %c0_40] : memref<4x16x16xf32, #tpu.memory_space<vmem>>, vector<1x16x16xf32>
    %103 = vector.shape_cast %102 : vector<1x16x16xf32> to vector<16x16xf32>
    %104 = arith.addf %101, %103 : vector<16x16xf32>
    %cst_41 = arith.constant dense<0xFF800000> : vector<16xf32>
    %105 = vector.multi_reduction <maximumf>, %104, %cst_41 [1] : vector<16x16xf32> to vector<16xf32>
    %106 = vector.shape_cast %105 : vector<16xf32> to vector<16x1xf32>
    %107 = vector.broadcast %106 : vector<16x1xf32> to vector<16x16xf32>
    %108 = arith.subf %104, %107 : vector<16x16xf32>
    %109 = math.exp %108 : vector<16x16xf32>
    %cst_42 = arith.constant dense<0.000000e+00> : vector<16xf32>
    %110 = vector.multi_reduction <add>, %109, %cst_42 [1] : vector<16x16xf32> to vector<16xf32>
    %111 = vector.shape_cast %110 : vector<16xf32> to vector<16x1xf32>
    %112 = arith.truncf %109 : vector<16x16xf32> to vector<16x16xbf16>
    %cst_43 = arith.constant dense<0.000000e+00> : vector<16x8xf32>
    %113 = tpu.matmul %112, %96, %cst_43 {dimension_numbers = #tpu.dot_dimension_numbers<[1], [0], [0], [1], [0, 0, 1, 1], [], []>} : vector<16x16xbf16>, vector<16x8xbf16>, vector<16x8xf32> -> vector<16x8xf32>
    %114 = vector.broadcast %111 : vector<16x1xf32> to vector<16x8xf32>
    %115 = arith.divf %113, %114 : vector<16x8xf32>
    %116 = vector.extract_strided_slice %46 {offsets = [0, 24], sizes = [16, 8], strides = [1, 1]} : vector<16x96xf32> to vector<16x8xf32>
    %117 = arith.truncf %116 : vector<16x8xf32> to vector<16x8xbf16>
    %118 = vector.extract_strided_slice %46 {offsets = [0, 56], sizes = [16, 8], strides = [1, 1]} : vector<16x96xf32> to vector<16x8xf32>
    %119 = arith.truncf %118 : vector<16x8xf32> to vector<16x8xbf16>
    %120 = vector.extract_strided_slice %46 {offsets = [0, 88], sizes = [16, 8], strides = [1, 1]} : vector<16x96xf32> to vector<16x8xf32>
    %121 = arith.truncf %120 : vector<16x8xf32> to vector<16x8xbf16>
    %cst_44 = arith.constant dense<0.000000e+00> : vector<16x16xf32>
    %122 = tpu.matmul %121, %117, %cst_44 {dimension_numbers = #tpu.dot_dimension_numbers<[1], [1], [0], [0], [0, 0, 1, 0], [], []>} : vector<16x8xbf16>, vector<16x8xbf16>, vector<16x16xf32> -> vector<16x16xf32>
    %cst_45 = arith.constant 0.353553385 : f32
    %123 = vector.broadcast %cst_45 : f32 to vector<16x16xf32>
    %124 = arith.mulf %122, %123 : vector<16x16xf32>
    %c3 = arith.constant 3 : index
    %c0_46 = arith.constant 0 : index
    %c0_47 = arith.constant 0 : index
    %125 = vector.load %arg3[%c3, %c0_46, %c0_47] : memref<4x16x16xf32, #tpu.memory_space<vmem>>, vector<1x16x16xf32>
    %126 = vector.shape_cast %125 : vector<1x16x16xf32> to vector<16x16xf32>
    %127 = arith.addf %124, %126 : vector<16x16xf32>
    %cst_48 = arith.constant dense<0xFF800000> : vector<16xf32>
    %128 = vector.multi_reduction <maximumf>, %127, %cst_48 [1] : vector<16x16xf32> to vector<16xf32>
    %129 = vector.shape_cast %128 : vector<16xf32> to vector<16x1xf32>
    %130 = vector.broadcast %129 : vector<16x1xf32> to vector<16x16xf32>
    %131 = arith.subf %127, %130 : vector<16x16xf32>
    %132 = math.exp %131 : vector<16x16xf32>
    %cst_49 = arith.constant dense<0.000000e+00> : vector<16xf32>
    %133 = vector.multi_reduction <add>, %132, %cst_49 [1] : vector<16x16xf32> to vector<16xf32>
    %134 = vector.shape_cast %133 : vector<16xf32> to vector<16x1xf32>
    %135 = arith.truncf %132 : vector<16x16xf32> to vector<16x16xbf16>
    %cst_50 = arith.constant dense<0.000000e+00> : vector<16x8xf32>
    %136 = tpu.matmul %135, %119, %cst_50 {dimension_numbers = #tpu.dot_dimension_numbers<[1], [0], [0], [1], [0, 0, 1, 1], [], []>} : vector<16x16xbf16>, vector<16x8xbf16>, vector<16x8xf32> -> vector<16x8xf32>
    %137 = vector.broadcast %134 : vector<16x1xf32> to vector<16x8xf32>
    %138 = arith.divf %136, %137 : vector<16x8xf32>
    %139 = tpu.concatenate %69, %92, %115, %138 in 1 : vector<16x8xf32>, vector<16x8xf32>, vector<16x8xf32>, vector<16x8xf32> -> vector<16x32xf32>
    %140 = arith.truncf %139 : vector<16x32xf32> to vector<16x32xbf16>
    %cst_51 = arith.constant dense<0.000000e+00> : vector<16x96xf32>
    %141 = tpu.matmul %140, %2, %cst_51 {dimension_numbers = #tpu.dot_dimension_numbers<[1], [0], [0], [1], [0, 0, 1, 1], [], []>} : vector<16x32xbf16>, vector<32x96xbf16>, vector<16x96xf32> -> vector<16x96xf32>
    %142 = vector.extract_strided_slice %141 {offsets = [0, 0], sizes = [16, 8], strides = [1, 1]} : vector<16x96xf32> to vector<16x8xf32>
    %143 = arith.truncf %142 : vector<16x8xf32> to vector<16x8xbf16>
    %144 = vector.extract_strided_slice %141 {offsets = [0, 32], sizes = [16, 8], strides = [1, 1]} : vector<16x96xf32> to vector<16x8xf32>
    %145 = arith.truncf %144 : vector<16x8xf32> to vector<16x8xbf16>
    %146 = vector.extract_strided_slice %141 {offsets = [0, 64], sizes = [16, 8], strides = [1, 1]} : vector<16x96xf32> to vector<16x8xf32>
    %147 = arith.truncf %146 : vector<16x8xf32> to vector<16x8xbf16>
    %cst_52 = arith.constant dense<0.000000e+00> : vector<16x16xf32>
    %148 = tpu.matmul %147, %143, %cst_52 {dimension_numbers = #tpu.dot_dimension_numbers<[1], [1], [0], [0], [0, 0, 1, 0], [], []>} : vector<16x8xbf16>, vector<16x8xbf16>, vector<16x16xf32> -> vector<16x16xf32>
    %cst_53 = arith.constant 0.353553385 : f32
    %149 = vector.broadcast %cst_53 : f32 to vector<16x16xf32>
    %150 = arith.mulf %148, %149 : vector<16x16xf32>
    %c0_54 = arith.constant 0 : index
    %c0_55 = arith.constant 0 : index
    %c0_56 = arith.constant 0 : index
    %151 = vector.load %arg3[%c0_54, %c0_55, %c0_56] : memref<4x16x16xf32, #tpu.memory_space<vmem>>, vector<1x16x16xf32>
    %152 = vector.shape_cast %151 : vector<1x16x16xf32> to vector<16x16xf32>
    %153 = arith.addf %150, %152 : vector<16x16xf32>
    %cst_57 = arith.constant dense<0xFF800000> : vector<16xf32>
    %154 = vector.multi_reduction <maximumf>, %153, %cst_57 [1] : vector<16x16xf32> to vector<16xf32>
    %155 = vector.shape_cast %154 : vector<16xf32> to vector<16x1xf32>
    %156 = vector.broadcast %155 : vector<16x1xf32> to vector<16x16xf32>
    %157 = arith.subf %153, %156 : vector<16x16xf32>
    %158 = math.exp %157 : vector<16x16xf32>
    %cst_58 = arith.constant dense<0.000000e+00> : vector<16xf32>
    %159 = vector.multi_reduction <add>, %158, %cst_58 [1] : vector<16x16xf32> to vector<16xf32>
    %160 = vector.shape_cast %159 : vector<16xf32> to vector<16x1xf32>
    %161 = arith.truncf %158 : vector<16x16xf32> to vector<16x16xbf16>
    %cst_59 = arith.constant dense<0.000000e+00> : vector<16x8xf32>
    %162 = tpu.matmul %161, %145, %cst_59 {dimension_numbers = #tpu.dot_dimension_numbers<[1], [0], [0], [1], [0, 0, 1, 1], [], []>} : vector<16x16xbf16>, vector<16x8xbf16>, vector<16x8xf32> -> vector<16x8xf32>
    %163 = vector.broadcast %160 : vector<16x1xf32> to vector<16x8xf32>
    %164 = arith.divf %162, %163 : vector<16x8xf32>
    %165 = vector.extract_strided_slice %141 {offsets = [0, 8], sizes = [16, 8], strides = [1, 1]} : vector<16x96xf32> to vector<16x8xf32>
    %166 = arith.truncf %165 : vector<16x8xf32> to vector<16x8xbf16>
    %167 = vector.extract_strided_slice %141 {offsets = [0, 40], sizes = [16, 8], strides = [1, 1]} : vector<16x96xf32> to vector<16x8xf32>
    %168 = arith.truncf %167 : vector<16x8xf32> to vector<16x8xbf16>
    %169 = vector.extract_strided_slice %141 {offsets = [0, 72], sizes = [16, 8], strides = [1, 1]} : vector<16x96xf32> to vector<16x8xf32>
    %170 = arith.truncf %169 : vector<16x8xf32> to vector<16x8xbf16>
    %cst_60 = arith.constant dense<0.000000e+00> : vector<16x16xf32>
    %171 = tpu.matmul %170, %166, %cst_60 {dimension_numbers = #tpu.dot_dimension_numbers<[1], [1], [0], [0], [0, 0, 1, 0], [], []>} : vector<16x8xbf16>, vector<16x8xbf16>, vector<16x16xf32> -> vector<16x16xf32>
    %cst_61 = arith.constant 0.353553385 : f32
    %172 = vector.broadcast %cst_61 : f32 to vector<16x16xf32>
    %173 = arith.mulf %171, %172 : vector<16x16xf32>
    %c1_62 = arith.constant 1 : index
    %c0_63 = arith.constant 0 : index
    %c0_64 = arith.constant 0 : index
    %174 = vector.load %arg3[%c1_62, %c0_63, %c0_64] : memref<4x16x16xf32, #tpu.memory_space<vmem>>, vector<1x16x16xf32>
    %175 = vector.shape_cast %174 : vector<1x16x16xf32> to vector<16x16xf32>
    %176 = arith.addf %173, %175 : vector<16x16xf32>
    %cst_65 = arith.constant dense<0xFF800000> : vector<16xf32>
    %177 = vector.multi_reduction <maximumf>, %176, %cst_65 [1] : vector<16x16xf32> to vector<16xf32>
    %178 = vector.shape_cast %177 : vector<16xf32> to vector<16x1xf32>
    %179 = vector.broadcast %178 : vector<16x1xf32> to vector<16x16xf32>
    %180 = arith.subf %176, %179 : vector<16x16xf32>
    %181 = math.exp %180 : vector<16x16xf32>
    %cst_66 = arith.constant dense<0.000000e+00> : vector<16xf32>
    %182 = vector.multi_reduction <add>, %181, %cst_66 [1] : vector<16x16xf32> to vector<16xf32>
    %183 = vector.shape_cast %182 : vector<16xf32> to vector<16x1xf32>
    %184 = arith.truncf %181 : vector<16x16xf32> to vector<16x16xbf16>
    %cst_67 = arith.constant dense<0.000000e+00> : vector<16x8xf32>
    %185 = tpu.matmul %184, %168, %cst_67 {dimension_numbers = #tpu.dot_dimension_numbers<[1], [0], [0], [1], [0, 0, 1, 1], [], []>} : vector<16x16xbf16>, vector<16x8xbf16>, vector<16x8xf32> -> vector<16x8xf32>
    %186 = vector.broadcast %183 : vector<16x1xf32> to vector<16x8xf32>
    %187 = arith.divf %185, %186 : vector<16x8xf32>
    %188 = vector.extract_strided_slice %141 {offsets = [0, 16], sizes = [16, 8], strides = [1, 1]} : vector<16x96xf32> to vector<16x8xf32>
    %189 = arith.truncf %188 : vector<16x8xf32> to vector<16x8xbf16>
    %190 = vector.extract_strided_slice %141 {offsets = [0, 48], sizes = [16, 8], strides = [1, 1]} : vector<16x96xf32> to vector<16x8xf32>
    %191 = arith.truncf %190 : vector<16x8xf32> to vector<16x8xbf16>
    %192 = vector.extract_strided_slice %141 {offsets = [0, 80], sizes = [16, 8], strides = [1, 1]} : vector<16x96xf32> to vector<16x8xf32>
    %193 = arith.truncf %192 : vector<16x8xf32> to vector<16x8xbf16>
    %cst_68 = arith.constant dense<0.000000e+00> : vector<16x16xf32>
    %194 = tpu.matmul %193, %189, %cst_68 {dimension_numbers = #tpu.dot_dimension_numbers<[1], [1], [0], [0], [0, 0, 1, 0], [], []>} : vector<16x8xbf16>, vector<16x8xbf16>, vector<16x16xf32> -> vector<16x16xf32>
    %cst_69 = arith.constant 0.353553385 : f32
    %195 = vector.broadcast %cst_69 : f32 to vector<16x16xf32>
    %196 = arith.mulf %194, %195 : vector<16x16xf32>
    %c2_70 = arith.constant 2 : index
    %c0_71 = arith.constant 0 : index
    %c0_72 = arith.constant 0 : index
    %197 = vector.load %arg3[%c2_70, %c0_71, %c0_72] : memref<4x16x16xf32, #tpu.memory_space<vmem>>, vector<1x16x16xf32>
    %198 = vector.shape_cast %197 : vector<1x16x16xf32> to vector<16x16xf32>
    %199 = arith.addf %196, %198 : vector<16x16xf32>
    %cst_73 = arith.constant dense<0xFF800000> : vector<16xf32>
    %200 = vector.multi_reduction <maximumf>, %199, %cst_73 [1] : vector<16x16xf32> to vector<16xf32>
    %201 = vector.shape_cast %200 : vector<16xf32> to vector<16x1xf32>
    %202 = vector.broadcast %201 : vector<16x1xf32> to vector<16x16xf32>
    %203 = arith.subf %199, %202 : vector<16x16xf32>
    %204 = math.exp %203 : vector<16x16xf32>
    %cst_74 = arith.constant dense<0.000000e+00> : vector<16xf32>
    %205 = vector.multi_reduction <add>, %204, %cst_74 [1] : vector<16x16xf32> to vector<16xf32>
    %206 = vector.shape_cast %205 : vector<16xf32> to vector<16x1xf32>
    %207 = arith.truncf %204 : vector<16x16xf32> to vector<16x16xbf16>
    %cst_75 = arith.constant dense<0.000000e+00> : vector<16x8xf32>
    %208 = tpu.matmul %207, %191, %cst_75 {dimension_numbers = #tpu.dot_dimension_numbers<[1], [0], [0], [1], [0, 0, 1, 1], [], []>} : vector<16x16xbf16>, vector<16x8xbf16>, vector<16x8xf32> -> vector<16x8xf32>
    %209 = vector.broadcast %206 : vector<16x1xf32> to vector<16x8xf32>
    %210 = arith.divf %208, %209 : vector<16x8xf32>
    %211 = vector.extract_strided_slice %141 {offsets = [0, 24], sizes = [16, 8], strides = [1, 1]} : vector<16x96xf32> to vector<16x8xf32>
    %212 = arith.truncf %211 : vector<16x8xf32> to vector<16x8xbf16>
    %213 = vector.extract_strided_slice %141 {offsets = [0, 56], sizes = [16, 8], strides = [1, 1]} : vector<16x96xf32> to vector<16x8xf32>
    %214 = arith.truncf %213 : vector<16x8xf32> to vector<16x8xbf16>
    %215 = vector.extract_strided_slice %141 {offsets = [0, 88], sizes = [16, 8], strides = [1, 1]} : vector<16x96xf32> to vector<16x8xf32>
    %216 = arith.truncf %215 : vector<16x8xf32> to vector<16x8xbf16>
    %cst_76 = arith.constant dense<0.000000e+00> : vector<16x16xf32>
    %217 = tpu.matmul %216, %212, %cst_76 {dimension_numbers = #tpu.dot_dimension_numbers<[1], [1], [0], [0], [0, 0, 1, 0], [], []>} : vector<16x8xbf16>, vector<16x8xbf16>, vector<16x16xf32> -> vector<16x16xf32>
    %cst_77 = arith.constant 0.353553385 : f32
    %218 = vector.broadcast %cst_77 : f32 to vector<16x16xf32>
    %219 = arith.mulf %217, %218 : vector<16x16xf32>
    %c3_78 = arith.constant 3 : index
    %c0_79 = arith.constant 0 : index
    %c0_80 = arith.constant 0 : index
    %220 = vector.load %arg3[%c3_78, %c0_79, %c0_80] : memref<4x16x16xf32, #tpu.memory_space<vmem>>, vector<1x16x16xf32>
    %221 = vector.shape_cast %220 : vector<1x16x16xf32> to vector<16x16xf32>
    %222 = arith.addf %219, %221 : vector<16x16xf32>
    %cst_81 = arith.constant dense<0xFF800000> : vector<16xf32>
    %223 = vector.multi_reduction <maximumf>, %222, %cst_81 [1] : vector<16x16xf32> to vector<16xf32>
    %224 = vector.shape_cast %223 : vector<16xf32> to vector<16x1xf32>
    %225 = vector.broadcast %224 : vector<16x1xf32> to vector<16x16xf32>
    %226 = arith.subf %222, %225 : vector<16x16xf32>
    %227 = math.exp %226 : vector<16x16xf32>
    %cst_82 = arith.constant dense<0.000000e+00> : vector<16xf32>
    %228 = vector.multi_reduction <add>, %227, %cst_82 [1] : vector<16x16xf32> to vector<16xf32>
    %229 = vector.shape_cast %228 : vector<16xf32> to vector<16x1xf32>
    %230 = arith.truncf %227 : vector<16x16xf32> to vector<16x16xbf16>
    %cst_83 = arith.constant dense<0.000000e+00> : vector<16x8xf32>
    %231 = tpu.matmul %230, %214, %cst_83 {dimension_numbers = #tpu.dot_dimension_numbers<[1], [0], [0], [1], [0, 0, 1, 1], [], []>} : vector<16x16xbf16>, vector<16x8xbf16>, vector<16x8xf32> -> vector<16x8xf32>
    %232 = vector.broadcast %229 : vector<16x1xf32> to vector<16x8xf32>
    %233 = arith.divf %231, %232 : vector<16x8xf32>
    %234 = tpu.concatenate %164, %187, %210, %233 in 1 : vector<16x8xf32>, vector<16x8xf32>, vector<16x8xf32>, vector<16x8xf32> -> vector<16x32xf32>
    %235 = arith.addf %234, %139 : vector<16x32xf32>
    %cst_84 = arith.constant dense<0.000000e+00> : vector<16xf32>
    %236 = vector.multi_reduction <add>, %235, %cst_84 [1] : vector<16x32xf32> to vector<16xf32>
    %237 = vector.shape_cast %236 : vector<16xf32> to vector<16x1xf32>
    %cst_85 = arith.constant 3.200000e+01 : f32
    %238 = vector.broadcast %cst_85 : f32 to vector<16x1xf32>
    %239 = arith.divf %237, %238 : vector<16x1xf32>
    %240 = vector.broadcast %239 : vector<16x1xf32> to vector<16x32xf32>
    %241 = arith.subf %235, %240 : vector<16x32xf32>
    %242 = arith.mulf %241, %241 : vector<16x32xf32>
    %cst_86 = arith.constant dense<0.000000e+00> : vector<16xf32>
    %243 = vector.multi_reduction <add>, %242, %cst_86 [1] : vector<16x32xf32> to vector<16xf32>
    %244 = vector.shape_cast %243 : vector<16xf32> to vector<16x1xf32>
    %cst_87 = arith.constant 3.200000e+01 : f32
    %245 = vector.broadcast %cst_87 : f32 to vector<16x1xf32>
    %246 = arith.divf %244, %245 : vector<16x1xf32>
    %247 = vector.broadcast %239 : vector<16x1xf32> to vector<16x32xf32>
    %248 = arith.subf %235, %247 : vector<16x32xf32>
    %cst_88 = arith.constant 9.99999974E-6 : f32
    %249 = vector.broadcast %cst_88 : f32 to vector<16x1xf32>
    %250 = arith.addf %246, %249 : vector<16x1xf32>
    %251 = math.rsqrt %250 : vector<16x1xf32>
    %252 = vector.broadcast %251 : vector<16x1xf32> to vector<16x32xf32>
    %253 = arith.mulf %248, %252 : vector<16x32xf32>
    %c0_89 = arith.constant 0 : index
    %c0_90 = arith.constant 0 : index
    %254 = vector.load %arg8[%c0_89, %c0_90] : memref<1x32xf32, #tpu.memory_space<vmem>>, vector<1x32xf32>
    %255 = vector.broadcast %254 : vector<1x32xf32> to vector<16x32xf32>
    %256 = arith.mulf %253, %255 : vector<16x32xf32>
    %c0_91 = arith.constant 0 : index
    %c0_92 = arith.constant 0 : index
    %257 = vector.load %arg9[%c0_91, %c0_92] : memref<1x32xf32, #tpu.memory_space<vmem>>, vector<1x32xf32>
    %258 = vector.broadcast %257 : vector<1x32xf32> to vector<16x32xf32>
    %259 = arith.addf %256, %258 : vector<16x32xf32>
    %260 = arith.truncf %259 : vector<16x32xf32> to vector<16x32xbf16>
    %cst_93 = arith.constant dense<0.000000e+00> : vector<16x32xf32>
    %261 = tpu.matmul %13, %260, %cst_93 {dimension_numbers = #tpu.dot_dimension_numbers<[1], [0], [0], [1], [0, 0, 1, 1], [], []>} : vector<16x16xbf16>, vector<16x32xbf16>, vector<16x32xf32> -> vector<16x32xf32>
    %262 = arith.truncf %261 : vector<16x32xf32> to vector<16x32xbf16>
    %cst_94 = arith.constant dense<0.000000e+00> : vector<16x32xf32>
    %263 = tpu.matmul %20, %260, %cst_94 {dimension_numbers = #tpu.dot_dimension_numbers<[1], [0], [0], [1], [0, 0, 1, 1], [], []>} : vector<16x16xbf16>, vector<16x32xbf16>, vector<16x32xf32> -> vector<16x32xf32>
    %264 = arith.truncf %263 : vector<16x32xf32> to vector<16x32xbf16>
    %265 = vector.extract_strided_slice %3 {offsets = [0, 0], sizes = [32, 64], strides = [1, 1]} : vector<96x64xbf16> to vector<32x64xbf16>
    %cst_95 = arith.constant dense<0.000000e+00> : vector<16x64xf32>
    %266 = tpu.matmul %262, %265, %cst_95 {dimension_numbers = #tpu.dot_dimension_numbers<[1], [0], [0], [1], [0, 0, 1, 1], [], []>} : vector<16x32xbf16>, vector<32x64xbf16>, vector<16x64xf32> -> vector<16x64xf32>
    %267 = vector.extract_strided_slice %3 {offsets = [32, 0], sizes = [32, 64], strides = [1, 1]} : vector<96x64xbf16> to vector<32x64xbf16>
    %cst_96 = arith.constant dense<0.000000e+00> : vector<16x64xf32>
    %268 = tpu.matmul %260, %267, %cst_96 {dimension_numbers = #tpu.dot_dimension_numbers<[1], [0], [0], [1], [0, 0, 1, 1], [], []>} : vector<16x32xbf16>, vector<32x64xbf16>, vector<16x64xf32> -> vector<16x64xf32>
    %269 = arith.addf %266, %268 : vector<16x64xf32>
    %270 = vector.extract_strided_slice %3 {offsets = [64, 0], sizes = [32, 64], strides = [1, 1]} : vector<96x64xbf16> to vector<32x64xbf16>
    %cst_97 = arith.constant dense<0.000000e+00> : vector<16x64xf32>
    %271 = tpu.matmul %264, %270, %cst_97 {dimension_numbers = #tpu.dot_dimension_numbers<[1], [0], [0], [1], [0, 0, 1, 1], [], []>} : vector<16x32xbf16>, vector<32x64xbf16>, vector<16x64xf32> -> vector<16x64xf32>
    %272 = arith.addf %269, %271 : vector<16x64xf32>
    %cst_98 = arith.constant 0.000000e+00 : f32
    %273 = vector.broadcast %cst_98 : f32 to vector<16x64xf32>
    %274 = arith.maximumf %272, %273 : vector<16x64xf32>
    %275 = arith.truncf %274 : vector<16x64xf32> to vector<16x64xbf16>
    %cst_99 = arith.constant dense<0.000000e+00> : vector<16x64xf32>
    %276 = tpu.matmul %13, %275, %cst_99 {dimension_numbers = #tpu.dot_dimension_numbers<[1], [0], [0], [1], [0, 0, 1, 1], [], []>} : vector<16x16xbf16>, vector<16x64xbf16>, vector<16x64xf32> -> vector<16x64xf32>
    %277 = arith.truncf %276 : vector<16x64xf32> to vector<16x64xbf16>
    %cst_100 = arith.constant dense<0.000000e+00> : vector<16x64xf32>
    %278 = tpu.matmul %20, %275, %cst_100 {dimension_numbers = #tpu.dot_dimension_numbers<[1], [0], [0], [1], [0, 0, 1, 1], [], []>} : vector<16x16xbf16>, vector<16x64xbf16>, vector<16x64xf32> -> vector<16x64xf32>
    %279 = arith.truncf %278 : vector<16x64xf32> to vector<16x64xbf16>
    %280 = vector.extract_strided_slice %4 {offsets = [0, 0], sizes = [64, 32], strides = [1, 1]} : vector<192x32xbf16> to vector<64x32xbf16>
    %cst_101 = arith.constant dense<0.000000e+00> : vector<16x32xf32>
    %281 = tpu.matmul %277, %280, %cst_101 {dimension_numbers = #tpu.dot_dimension_numbers<[1], [0], [0], [1], [0, 0, 1, 1], [], []>} : vector<16x64xbf16>, vector<64x32xbf16>, vector<16x32xf32> -> vector<16x32xf32>
    %282 = vector.extract_strided_slice %4 {offsets = [64, 0], sizes = [64, 32], strides = [1, 1]} : vector<192x32xbf16> to vector<64x32xbf16>
    %cst_102 = arith.constant dense<0.000000e+00> : vector<16x32xf32>
    %283 = tpu.matmul %275, %282, %cst_102 {dimension_numbers = #tpu.dot_dimension_numbers<[1], [0], [0], [1], [0, 0, 1, 1], [], []>} : vector<16x64xbf16>, vector<64x32xbf16>, vector<16x32xf32> -> vector<16x32xf32>
    %284 = arith.addf %281, %283 : vector<16x32xf32>
    %285 = vector.extract_strided_slice %4 {offsets = [128, 0], sizes = [64, 32], strides = [1, 1]} : vector<192x32xbf16> to vector<64x32xbf16>
    %cst_103 = arith.constant dense<0.000000e+00> : vector<16x32xf32>
    %286 = tpu.matmul %279, %285, %cst_103 {dimension_numbers = #tpu.dot_dimension_numbers<[1], [0], [0], [1], [0, 0, 1, 1], [], []>} : vector<16x64xbf16>, vector<64x32xbf16>, vector<16x32xf32> -> vector<16x32xf32>
    %287 = arith.addf %284, %286 : vector<16x32xf32>
    %288 = arith.addf %287, %259 : vector<16x32xf32>
    %cst_104 = arith.constant dense<0.000000e+00> : vector<16xf32>
    %289 = vector.multi_reduction <add>, %288, %cst_104 [1] : vector<16x32xf32> to vector<16xf32>
    %290 = vector.shape_cast %289 : vector<16xf32> to vector<16x1xf32>
    %cst_105 = arith.constant 3.200000e+01 : f32
    %291 = vector.broadcast %cst_105 : f32 to vector<16x1xf32>
    %292 = arith.divf %290, %291 : vector<16x1xf32>
    %293 = vector.broadcast %292 : vector<16x1xf32> to vector<16x32xf32>
    %294 = arith.subf %288, %293 : vector<16x32xf32>
    %295 = arith.mulf %294, %294 : vector<16x32xf32>
    %cst_106 = arith.constant dense<0.000000e+00> : vector<16xf32>
    %296 = vector.multi_reduction <add>, %295, %cst_106 [1] : vector<16x32xf32> to vector<16xf32>
    %297 = vector.shape_cast %296 : vector<16xf32> to vector<16x1xf32>
    %cst_107 = arith.constant 3.200000e+01 : f32
    %298 = vector.broadcast %cst_107 : f32 to vector<16x1xf32>
    %299 = arith.divf %297, %298 : vector<16x1xf32>
    %300 = vector.broadcast %292 : vector<16x1xf32> to vector<16x32xf32>
    %301 = arith.subf %288, %300 : vector<16x32xf32>
    %cst_108 = arith.constant 9.99999974E-6 : f32
    %302 = vector.broadcast %cst_108 : f32 to vector<16x1xf32>
    %303 = arith.addf %299, %302 : vector<16x1xf32>
    %304 = math.rsqrt %303 : vector<16x1xf32>
    %305 = vector.broadcast %304 : vector<16x1xf32> to vector<16x32xf32>
    %306 = arith.mulf %301, %305 : vector<16x32xf32>
    %c0_109 = arith.constant 0 : index
    %c0_110 = arith.constant 0 : index
    %307 = vector.load %arg10[%c0_109, %c0_110] : memref<1x32xf32, #tpu.memory_space<vmem>>, vector<1x32xf32>
    %308 = vector.broadcast %307 : vector<1x32xf32> to vector<16x32xf32>
    %309 = arith.mulf %306, %308 : vector<16x32xf32>
    %c0_111 = arith.constant 0 : index
    %c0_112 = arith.constant 0 : index
    %310 = vector.load %arg11[%c0_111, %c0_112] : memref<1x32xf32, #tpu.memory_space<vmem>>, vector<1x32xf32>
    %311 = vector.broadcast %310 : vector<1x32xf32> to vector<16x32xf32>
    %312 = arith.addf %309, %311 : vector<16x32xf32>
    %c0_113 = arith.constant 0 : index
    %c0_114 = arith.constant 0 : index
    %c0_115 = arith.constant 0 : index
    %313 = vector.load %arg12[%c0_113, %c0_114, %c0_115] : memref<1x16x32xf32, #tpu.memory_space<vmem>>, vector<1x16x32xf32>
    %314 = vector.shape_cast %313 : vector<1x16x32xf32> to vector<16x32xf32>
    %315 = vector.shape_cast %312 : vector<16x32xf32> to vector<1x16x32xf32>
    tpu.vector_store %arg12[%c0_113, %c0_114, %c0_115], %315 {strides = array<i32>} : memref<1x16x32xf32, #tpu.memory_space<vmem>>, vector<1x16x32xf32>,
    return
  }
  func.func @transform_0(%arg0: i32) -> (i32, i32, i32) {
    %c0_i32 = arith.constant 0 : i32
    %c0_i32_0 = arith.constant 0 : i32
    %c0_i32_1 = arith.constant 0 : i32
    return %arg0, %c0_i32, %c0_i32_0 : i32, i32, i32
  }
  func.func @transform_1(%arg0: i32) -> (i32, i32) {
    %c0_i32 = arith.constant 0 : i32
    %c0_i32_0 = arith.constant 0 : i32
    %c0_i32_1 = arith.constant 0 : i32
    return %c0_i32, %c0_i32_0 : i32, i32
  }
  func.func @transform_2(%arg0: i32) -> (i32, i32, i32) {
    %c0_i32 = arith.constant 0 : i32
    %c0_i32_0 = arith.constant 0 : i32
    %c0_i32_1 = arith.constant 0 : i32
    %c0_i32_2 = arith.constant 0 : i32
    return %c0_i32, %c0_i32_0, %c0_i32_1 : i32, i32, i32
  }
  func.func @transform_3(%arg0: i32) -> (i32, i32) {
    %c0_i32 = arith.constant 0 : i32
    %c0_i32_0 = arith.constant 0 : i32
    %c0_i32_1 = arith.constant 0 : i32
    return %c0_i32, %c0_i32_0 : i32, i32
  }
  func.func @transform_4(%arg0: i32) -> (i32, i32) {
    %c0_i32 = arith.constant 0 : i32
    %c0_i32_0 = arith.constant 0 : i32
    %c0_i32_1 = arith.constant 0 : i32
    return %c0_i32, %c0_i32_0 : i32, i32
  }
  func.func @transform_5(%arg0: i32) -> (i32, i32) {
    %c0_i32 = arith.constant 0 : i32
    %c0_i32_0 = arith.constant 0 : i32
    %c0_i32_1 = arith.constant 0 : i32
    return %c0_i32, %c0_i32_0 : i32, i32
  }
  func.func @transform_6(%arg0: i32) -> (i32, i32) {
    %c0_i32 = arith.constant 0 : i32
    %c0_i32_0 = arith.constant 0 : i32
    %c0_i32_1 = arith.constant 0 : i32
    return %c0_i32, %c0_i32_0 : i32, i32
  }
  func.func @transform_7(%arg0: i32) -> (i32, i32) {
    %c0_i32 = arith.constant 0 : i32
    %c0_i32_0 = arith.constant 0 : i32
    %c0_i32_1 = arith.constant 0 : i32
    return %c0_i32, %c0_i32_0 : i32, i32
  }
  func.func @transform_8(%arg0: i32) -> (i32, i32) {
    %c0_i32 = arith.constant 0 : i32
    %c0_i32_0 = arith.constant 0 : i32
    %c0_i32_1 = arith.constant 0 : i32
    return %c0_i32, %c0_i32_0 : i32, i32
  }
  func.func @transform_9(%arg0: i32) -> (i32, i32) {
    %c0_i32 = arith.constant 0 : i32
    %c0_i32_0 = arith.constant 0 : i32
    %c0_i32_1 = arith.constant 0 : i32
    return %c0_i32, %c0_i32_0 : i32, i32
  }
  func.func @transform_10(%arg0: i32) -> (i32, i32) {
    %c0_i32 = arith.constant 0 : i32
    %c0_i32_0 = arith.constant 0 : i32
    %c0_i32_1 = arith.constant 0 : i32
    return %c0_i32, %c0_i32_0 : i32, i32
  }
  func.func @transform_11(%arg0: i32) -> (i32, i32, i32) {
    %c0_i32 = arith.constant 0 : i32
    %c0_i32_0 = arith.constant 0 : i32
    %c0_i32_1 = arith.constant 0 : i32
    return %arg0, %c0_i32, %c0_i32_0 : i32, i32, i32
  }
}

</mosaic_0001>

<bundles_post_ra>
// kernel: attention_block_forward.1
= control target key start
LH: loop header
LB: loop body
LE: loop exit
PB: predicated region body
PF: predicated region fallthrough
CT: control target
= control target key end

     0   :  { %s3563_s0 = inlined_call_operand.vmem [shape: f32[2,16,32], index: 0, kind: input, shape index: {}]   ;;  %s3564_s1 = inlined_call_operand.vmem [shape: bf16[32,96], index: 1, kind: input, shape index: {}]   ;;  %s3565_s2 = inlined_call_operand.vmem [shape: f32[4,16,16], index: 2, kind: input, shape index: {}]   ;;  %s3566_s3 = inlined_call_operand.vmem [shape: bf16[96,64], index: 3, kind: input, shape index: {}]   ;;  %s3567_s4 = inlined_call_operand.vmem [shape: bf16[192,32], index: 4, kind: input, shape index: {}]   ;;  %s3568_s5 = inlined_call_operand.vmem [shape: f32[1,32], index: 5, kind: input, shape index: {}]   ;;  %s3569_s6 = inlined_call_operand.vmem [shape: f32[1,32], index: 6, kind: input, shape index: {}]   ;;  %s3570_s7 = inlined_call_operand.vmem [shape: f32[1,32], index: 7, kind: input, shape index: {}]   ;;  %s3571_s8 = inlined_call_operand.vmem [shape: f32[1,32], index: 8, kind: input, shape index: {}]   ;;  %s3572_s9 = inlined_call_operand.vmem [shape: f32[1,32], index: 9, kind: input, shape index: {}]   ;;  %s3573_s10 = inlined_call_operand.vmem [shape: f32[1,32], index: 10, kind: input, shape index: {}]   ;;  %s3574_s11 = inlined_call_operand.hbm [shape: f32[2,16,32], index: 11, kind: output, shape index: {}]  }
   0x1   :  { %3580 = sst [smem:[#allocation5_spill]] %s3563_s0 }
   0x2   :  { %3581 = sst [smem:[#allocation6_spill]] %s3564_s1 }
   0x3   :  { %3582 = sst [smem:[#allocation7_spill]] %s3565_s2 }
   0x4   :  { %16 = vsyncpa [#allocation3], 0 }
   0x5   :  { %18 = vsyncpa [#allocation3 + $0x1], 0  ;;  %s3035_s17 = smov 0   ;;  %s3037_s18 = smov 0  }
   0x6   :  { %s3039_s19 = smov 0   ;;  %s3041_s20 = smov 0  }
   0x7 LB: > { %s3056_s21 = sadd.s32 4294967295, %s2955_s20   ;;  %s2393_s22 = sadd.s32 4294967294, %s2955_s20   ;;  %s2955_s20 = sphi %s3041_s20, %s3595_s20   ;;  %s2951_s19 = sphi %s3039_s19, %s3594_s19   ;;  %s2947_s18 = sphi %s3037_s18, %s3593_s18   ;;  %s2943_s17 = sphi %s3035_s17, %s3592_s17  }
   0x8   : > { %s3060_s23 = sadd.s32 1, %s2955_s20   ;;  %s267_s24 = sadd.s32 1, %s2951_s19 }
   0x9   : > { %s264_s25 = ssub.s32 %s2955_s20, %s3060_s23  ;;  %p277_p0 = scmp.ne.s32.totalorder %s2951_s19, %s2947_s18 }
   0xa   : > { %p265_p1 = scmp.eq.s32.totalorder %s264_s25, 0  ;;  %p278_p2 = scmp.eq.s32.totalorder %s3056_s21, 1 }
   0xb   : > { %p283_p3 = scmp.ne.s32.totalorder %s2947_s18, %s2943_s17  ;;  %p284_p4 = scmp.eq.s32.totalorder %s2393_s22, 1 }
   0xc   : > { %s3071_s26 = scalar_select %p265_p1, %s2951_s19, %s267_s24  }
   0xd   : > { %p3073_p5 = por %p278_p2, %p277_p0  ;;  %p3077_p6 = por %p284_p4, %p283_p3 }
   0xe   : > { %p2396_p7 = scmp.ge.s32.totalorder %s2955_s20, 1  ;;  %p340_p8 = scmp.lt.s32.totalorder %s2955_s20, 3 }
  0x10   : > { %p341_p9 = pnand %p2396_p7, %p340_p8 }
  0x11   : > { %p380_p10 = scmp.lt.s32.totalorder (!%p341_p9), %s3056_s21, 1  ;;  %vm446_vm0 = vcmask (!%p341_p9), 261120   ;;  %s3585_s0 = sld [smem:[#allocation5_spill]] (!%p341_p9)  ;;  %v2957_v15 = vmov (!%p341_p9), 0.0   ;;  %vm2958_vm1 = vmmov (!%p341_p9), 0   ;;  %vm553_vm2 = vcmask (!%p341_p9), 64512  }
  0x12   : > { %344 = sbr.rel (%p341_p9) target bundleno = 4077 (0xfed), region = 64  ;;  %s3586_s1 = sld [smem:[#allocation6_spill]] (!%p341_p9)  ;;  %2537 = vmatprep.subr.bf16.mxu0 (!%p341_p9), %v2957_v15  ;;  %2545 = vmatprep.subr.bf16.mxu1 (!%p341_p9), %v2957_v15  ;;  %v2400_v25 = vld [vmem:[%s3568_s5] ss:$0 sm:$0xff] (!%p341_p9)  ;;  %vm607_vm3 = vcmask (!%p341_p9), 130048   ;;  %vm1090_vm4 = vcmask (!%p341_p9), 195584  }
  0x13   : > { %2541 = vmatprep.mubr.msk.bf16.mxu0 (!%p341_p9), %vm2958_vm1, %v2957_v15  ;;  %2547 = vmatprep.mubr.msk.bf16.mxu1 (!%p341_p9), %vm2958_vm1, %v2957_v15  ;;  %v2401_v29 = vld [vmem:[%s3569_s6] ss:$0 sm:$0xff] (!%p341_p9)  ;;  %s2959_s13 = smov (!%p341_p9), 120   ;;  %s2961_s15 = smov (!%p341_p9), 56   ;;  %vm2086_vm9 = vcmask (!%p341_p9), 523264  }
  0x14   : > { %s2962_s16 = smov (!%p341_p9), 48   ;;  %s2963_s22 = smov (!%p341_p9), 112  }
  0x15   : > { %s3576_s24 = smov (!%p341_p9), 40   ;;  %s2965_s25 = smov (!%p341_p9), 104  }
  0x16   : > { %s3587_s2 = sld [smem:[#allocation7_spill]] (!%p341_p9)  ;;  %s3577_s12 = smov (!%p341_p9), 72  }
  0x18   : > { %v3095_v14 = vld [vmem:[%s3586_s1] sm:$0xff] (!%p341_p9)   ;;  %v3103_v16 = vld [vmem:[%s3586_s1 + $0x8] sm:$0xff] (!%p341_p9)  }
  0x19   : > { %s381_s29 = scalar_select %p380_p10, %s3056_s21, 1  ;;  %2538 = vmatpush3.bf16.msra.mxu0 %v3095_v14 }
  0x1a   : > { %2539 = vmatprep.subr.bf16.mxu0 %v2957_v15 }
  0x1b   : > { %s2465_s30 = sshll.u32 %s381_s29, 4  ;;  %s3575_s29 = smov 96  }
  0x1c   : > { %s384_s14 = scalar_lea.vmem %s3585_s0, %s2465_s30  ;;  %v3168_v52 = vld [vmem:[%s3587_s2] sm:$0xff]  ;;  %v3173_v56 = vld [vmem:[%s3587_s2 + $0x8] sm:$0xff]  ;;  %s2967_s30 = smov 80  }
  0x1d   : > { %v386_v0 = vld [vmem:[%s384_s14] sm:$0xff]  ;;  %v387_v1 = vld [vmem:[%s384_s14 + $0x8] sm:$0xff]  ;;  %2540 = vmatpush3.bf16.msra.mxu0 %v3103_v16  ;;  %s2960_s14 = smov 64   ;;  %s2973_s0 = smov [#allocation2]  }
  0x1e   : > { %v447_v2 = vsel %vm446_vm0, %v386_v0, 0.0  ;;  %v450_v3 = vsel %vm446_vm0, %v387_v1, 0.0  ;;  %2551 = vmatprep.subr.bf16.mxu0 %v2957_v15  ;;  %s2897_s1 = sshll.u32 %s2973_s0, 4  ;;  %s2898_s1 = int_to_ptr.vmem [resolvable:$false] %s2897_s1 }
  0x1f   : > { %448 = vadd.xlane.f32.xlu0 %v447_v2 }
  0x23   : > { %451 = vadd.xlane.f32.xlu0 %v450_v3 }
  0xac   : > { %v449_v4 = vpop.xlane.xlu0 %448 }
  0xad   : > { %v454_v5 = vmul.f32 0.03125, %v449_v4  ;;  %v3187_v4 = vld [vmem:[%s3587_s2 + $0x18] sm:$0xff] }
  0xaf   : > { %v456_v6 = vsub.f32 %v386_v0, %v454_v5  ;;  %v3182_v0 = vld [vmem:[%s3587_s2 + $0x10] sm:$0xff] }
  0xb0   : > { %v452_v7 = vpop.xlane.xlu0 %451 }
  0xb1   : > { %v455_v8 = vmul.f32 0.03125, %v452_v7  ;;  %v458_v9 = vmul.f32 %v456_v6, %v456_v6 }
  0xb3   : > { %v457_v10 = vsub.f32 %v387_v1, %v455_v8  ;;  %v460_v11 = vsel %vm446_vm0, %v458_v9, 0.0 }
  0xb4   : > { %461 = vadd.xlane.f32.xlu1 %v460_v11  ;;  %v3195_v11 = vld [vmem:[%s3587_s2 + $0x20] sm:$0xff] }
  0xb5   : > { %v459_v12 = vmul.f32 %v457_v10, %v457_v10 }
  0xb7   : > { %v463_v13 = vsel %vm446_vm0, %v459_v12, 0.0 }
  0xb8   : > { %464 = vadd.xlane.f32.xlu1 %v463_v13 }
 0x141   : > { %v462_v17 = vpop.xlane.xlu1 %461 }
 0x142   : > { %v466_v18 = vmul.f32 0.03125, %v462_v17  ;;  %v3201_v17 = vld [vmem:[%s3587_s2 + $0x28] sm:$0xff] }
 0x144   : > { %v468_v19 = vadd.f32 1e-05, %v466_v18 }
 0x145   : > { %v465_v20 = vpop.xlane.xlu1 %464 }
 0x146   : > { %2817 = vrsqrt.f32 %v468_v19  ;;  %v467_v21 = vmul.f32 0.03125, %v465_v20 }
 0x148   : > { %v469_v22 = vadd.f32 1e-05, %v467_v21 }
 0x14a   : > { %2819 = vrsqrt.f32 %v469_v22 }
 0x150   : > { %v2818_v23 = vpop.eup %2817 }
 0x151   : > { %v472_v24 = vmul.f32 %v2818_v23, %v456_v6 }
 0x153   : > { %v481_v28 = vmul.f32 %v2400_v25, %v472_v24 }
 0x154   : > { %v2820_v26 = vpop.eup %2819 }
 0x155   : > { %v473_v27 = vmul.f32 %v2820_v26, %v457_v10  ;;  %v490_v31 = vadd.f32 %v2401_v29, %v481_v28 }
 0x157   : > { %v482_v30 = vmul.f32 %v2400_v25, %v473_v27  ;;  %v3210_v25 = vld [vmem:[%s3587_s2 + $0x30] sm:$0xff] }
 0x159   : > { %v491_v32 = vadd.f32 %v2401_v29, %v482_v30  ;;  %v3215_v29 = vld [vmem:[%s3587_s2 + $0x38] sm:$0xff] }
 0x15b   : > { %v492_v33 = vpack.c.bf16 %v491_v32, %v490_v31 }
 0x15d   : > { %2542 = vmatmul.mubr.msk.bf16.vlgmr.msra.gmra.mrb[0].mxu0 %vm446_vm0, %v492_v33 }
 0x15e   : > { %2553 = vmatprep.mubr.msk.bf16.mxu0 %vm2958_vm1, %v2957_v15 }
 0x230   : > { %v542_v34 = vpop.f32.mrb[0].mxu0 }
 0x231   : > { %v2543_v35 = vpop.f32.mrb[1].mxu0 }
 0x232   : > { %v545_v36 = vpop.f32.mrb[2].mxu0 }
 0x233   : > { %v3121_v37 = vpack.c.bf16 %v545_v36, %v542_v34  ;;  %v2544_v38 = vpop.f32.mrb[3].mxu0 }
 0x235   : > { %680 = vrot.lane.b32.xlu1 %v3121_v37, %s2959_s13  ;;  %551 = vrot.lane.b32.xlu0 %v3121_v37, %s2960_s14  ;;  %v558_v39 = vsel %vm553_vm2, %v3121_v37, 0 }
 0x236   : > { %2546 = vmatpush3.bf16.xpose.msra.mxu1 %v558_v39 }
 0x237   : > { %2557 = vmatprep.subr.bf16.mxu1 %v2957_v15 }
 0x239   : > { %678 = vrot.lane.b32.xlu1 %v3121_v37, %s2961_s15  ;;  %806 = vrot.lane.b32.xlu0 %v3121_v37, %s2962_s16 }
 0x23d   : > { %808 = vrot.lane.b32.xlu1 %v3121_v37, %s2963_s22  ;;  %934 = vrot.lane.b32.xlu0 %v3121_v37, %s3576_s24  ;;  %s2969_s24 = smov 88  }
 0x241   : > { %936 = vrot.lane.b32.xlu1 %v3121_v37, %s2965_s25 }
 0x245   : > { %627 = vrot.lane.b32.xlu1 %v3121_v37, %s3575_s29  ;;  %s3578_s29 = smov 8  }
 0x2a7   : > { %v681_v40 = vpop.permute.xlu1 %680  ;;  %v552_v41 = vpop.permute.xlu0 %551 }
 0x2a8   : > { %v686_v42 = vsel %vm553_vm2, %v681_v40, 0  ;;  %2548 = vmatmul.mubr.msk.bf16.vlgmr.msra.gmra.mrb[0].mxu1 %vm553_vm2, %v552_v41 }
 0x2a9   : > { %2558 = vmatpush3.bf16.xpose.msra.mxu1 %v686_v42  ;;  %2559 = vmatprep.mubr.msk.bf16.mxu1 %vm2958_vm1, %v2957_v15 }
 0x2aa   : > { %2569 = vmatprep.subr.bf16.mxu1 %v2957_v15 }
 0x2ab   : > { %v679_v43 = vpop.permute.xlu1 %678  ;;  %v807_v47 = vpop.permute.xlu0 %806 }
 0x2af   : > { %v809_v44 = vpop.permute.xlu1 %808  ;;  %v935_v50 = vpop.permute.xlu0 %934 }
 0x2b0   : > { %v814_v45 = vsel %vm553_vm2, %v809_v44, 0  ;;  %2560 = vmatmul.mubr.msk.bf16.vlgmr.msra.gmra.mrb[4].mxu1 %vm553_vm2, %v679_v43 }
 0x2b1   : > { %2570 = vmatpush3.bf16.xpose.msra.mxu1 %v814_v45  ;;  %2571 = vmatprep.mubr.msk.bf16.mxu1 %vm2958_vm1, %v2957_v15 }
 0x2b2   : > { %2581 = vmatprep.subr.bf16.mxu1 %v2957_v15 }
 0x2b3   : > { %v937_v46 = vpop.permute.xlu1 %936 }
 0x2b4   : > { %v942_v49 = vsel %vm553_vm2, %v937_v46, 0 }
 0x2b7   : > { %v628_v48 = vpop.permute.xlu1 %627 }
 0x2b8   : > { %2552 = vmatpush3.bf16.msra.mxu0 %v628_v48  ;;  %2572 = vmatmul.mubr.msk.bf16.vlgmr.msra.gmra.mrb[8].mxu1 %vm553_vm2, %v807_v47 }
 0x2b9   : > { %2582 = vmatpush3.bf16.xpose.msra.mxu1 %v942_v49  ;;  %2583 = vmatprep.mubr.msk.bf16.mxu1 %vm2958_vm1, %v2957_v15 }
 0x2ba   : > { %2563 = vmatprep.subr.bf16.mxu0 %v2957_v15  ;;  %2593 = vmatprep.subr.bf16.mxu1 %v2957_v15 }
 0x2c0   : > { %2584 = vmatmul.mubr.msk.bf16.vlgmr.msra.gmra.mrb[12].mxu1 %vm553_vm2, %v935_v50 }
 0x2c1   : > { %2594 = vmatpush3.bf16.msra.mxu1 %v3095_v14  ;;  %2597 = vmatprep.mubr.msk.bf16.mxu1 %vm2958_vm1, %v2957_v15 }
 0x2c2   : > { %2595 = vmatprep.subr.bf16.mxu1 %v2957_v15 }
 0x2c5   : > { %2596 = vmatpush3.bf16.msra.mxu1 %v3103_v16 }
 0x2c6   : > { %2607 = vmatprep.subr.bf16.mxu1 %v2957_v15 }
 0x37b   : > { %v594_v51 = vpop.f32.mrb[0].mxu1 }
 0x37c   : > { %v601_v53 = vmul.f32 0.35355338, %v594_v51  ;;  %v2549_v54 = vpop.f32.mrb[1].mxu1 }
 0x37d   : > { %v597_v55 = vpop.f32.mrb[2].mxu1 }
 0x37e   : > { %v602_v57 = vmul.f32 0.35355338, %v597_v55  ;;  %v2550_v58 = vpop.f32.mrb[3].mxu1  ;;  %v605_v59 = vadd.f32 %v3168_v52, %v601_v53 }
 0x380   : > { %v608_v60 = vsel %vm607_vm3, %v605_v59, -inf  ;;  %v606_v61 = vadd.f32 %v3173_v56, %v602_v57 }
 0x381   : > { %609 = vmax.xlane.f32.xlu1 %v608_v60 }
 0x382   : > { %v611_v62 = vsel %vm607_vm3, %v606_v61, -inf }
 0x383   : > { %612 = vmax.xlane.f32.xlu0 %v611_v62  ;;  %v722_v63 = vpop.f32.mrb[4].mxu1 }
 0x384   : > { %v729_v1 = vmul.f32 0.35355338, %v722_v63  ;;  %v2561_v2 = vpop.f32.mrb[5].mxu1 }
 0x385   : > { %v725_v3 = vpop.f32.mrb[6].mxu1 }
 0x386   : > { %v730_v5 = vmul.f32 0.35355338, %v725_v3  ;;  %v2562_v6 = vpop.f32.mrb[7].mxu1  ;;  %v734_v7 = vadd.f32 %v3182_v0, %v729_v1 }
 0x388   : > { %v736_v8 = vsel %vm607_vm3, %v734_v7, -inf  ;;  %v735_v9 = vadd.f32 %v3187_v4, %v730_v5 }
 0x389   : > { %737 = vmax.xlane.f32.xlu0 %v736_v8 }
 0x38a   : > { %v739_v14 = vsel %vm607_vm3, %v735_v9, -inf }
 0x38b   : > { %v850_v10 = vpop.f32.mrb[8].mxu1 }
 0x38c   : > { %v857_v12 = vmul.f32 0.35355338, %v850_v10  ;;  %v2573_v13 = vpop.f32.mrb[9].mxu1 }
 0x38d   : > { %740 = vmax.xlane.f32.xlu0 %v739_v14  ;;  %v853_v16 = vpop.f32.mrb[10].mxu1 }
 0x38e   : > { %v858_v18 = vmul.f32 0.35355338, %v853_v16  ;;  %v2574_v19 = vpop.f32.mrb[11].mxu1  ;;  %v862_v20 = vadd.f32 %v3195_v11, %v857_v12 }
 0x390   : > { %v864_v21 = vsel %vm607_vm3, %v862_v20, -inf  ;;  %v863_v22 = vadd.f32 %v3201_v17, %v858_v18 }
 0x391   : > { %865 = vmax.xlane.f32.xlu1 %v864_v21 }
 0x392   : > { %v867_v23 = vsel %vm607_vm3, %v863_v22, -inf }
 0x393   : > { %868 = vmax.xlane.f32.xlu0 %v867_v23  ;;  %v978_v24 = vpop.f32.mrb[12].mxu1 }
 0x394   : > { %v985_v26 = vmul.f32 0.35355338, %v978_v24  ;;  %v2585_v27 = vpop.f32.mrb[13].mxu1 }
 0x395   : > { %v981_v28 = vpop.f32.mrb[14].mxu1 }
 0x396   : > { %v986_v30 = vmul.f32 0.35355338, %v981_v28  ;;  %v2586_v31 = vpop.f32.mrb[15].mxu1  ;;  %v990_v32 = vadd.f32 %v3210_v25, %v985_v26 }
 0x398   : > { %v992_v33 = vsel %vm607_vm3, %v990_v32, -inf  ;;  %v991_v34 = vadd.f32 %v3215_v29, %v986_v30 }
 0x399   : > { %993 = vmax.xlane.f32.xlu1 %v992_v33 }
 0x39a   : > { %v995_v35 = vsel %vm607_vm3, %v991_v34, -inf }
 0x39b   : > { %996 = vmax.xlane.f32.xlu0 %v995_v35 }
 0x3aa   : > { %883 = vrot.lane.b32.xlu1 %v3121_v37, %s2967_s30 }
 0x3ae   : > { %1011 = vrot.lane.b32.xlu1 %v3121_v37, %s3577_s12  ;;  %s2971_s12 = smov 16  }
 0x3b1   : > { %755 = vrot.lane.b32.xlu0 %v3121_v37, %s2969_s24 }
 0x40e   : > { %v610_v36 = vpop.xlane.xlu1 %609 }
 0x40f   : > { %v614_v38 = vsub.f32 %v605_v59, %v610_v36 }
 0x410   : > { %v613_v39 = vpop.xlane.xlu0 %612 }
 0x411   : > { %v616_v40 = vmul.f32 1.442695, %v614_v38  ;;  %v615_v41 = vsub.f32 %v606_v61, %v613_v39 }
 0x413   : > { %v618_v42 = vmul.f32 1.442695, %v615_v41  ;;  %2821 = vpow2.f32 %v616_v40 }
 0x415   : > { %2823 = vpow2.f32 %v618_v42 }
 0x416   : > { %v738_v43 = vpop.xlane.xlu0 %737 }
 0x417   : > { %v742_v44 = vsub.f32 %v734_v7, %v738_v43 }
 0x419   : > { %v744_v45 = vmul.f32 1.442695, %v742_v44 }
 0x41a   : > { %v741_v46 = vpop.xlane.xlu0 %740 }
 0x41b   : > { %2825 = vpow2.f32 %v744_v45  ;;  %v743_v47 = vsub.f32 %v735_v9, %v741_v46 }
 0x41d   : > { %v746_v48 = vmul.f32 1.442695, %v743_v47  ;;  %v2822_v49 = vpop.eup %2821 }
 0x41e   : > { %v866_v50 = vpop.xlane.xlu1 %865  ;;  %v620_v23 = vsel %vm607_vm3, %v2822_v49, 0.0 }
 0x41f   : > { %v2824_v51 = vpop.eup %2823  ;;  %2827 = vpow2.f32 %v746_v48  ;;  %v870_v37 = vsub.f32 %v862_v20, %v866_v50 }
 0x420   : > { %v869_v53 = vpop.xlane.xlu0 %868  ;;  %v626_v54 = vpack.c.bf16 %v2824_v51, %v2822_v49  ;;  %v623_v24 = vsel %vm607_vm3, %v2824_v51, 0.0 }
 0x421   : > { %v872_v55 = vmul.f32 1.442695, %v870_v37  ;;  %v871_v57 = vsub.f32 %v863_v22, %v869_v53 }
 0x422   : > { %2554 = vmatmul.mubr.msk.bf16.vlgmr.msra.gmra.mrb[4].mxu0 %vm607_vm3, %v626_v54 }
 0x423   : > { %2829 = vpow2.f32 %v872_v55  ;;  %v874_v58 = vmul.f32 1.442695, %v871_v57  ;;  %2565 = vmatprep.mubr.msk.bf16.mxu0 %vm2958_vm1, %v2957_v15 }
 0x425   : > { %v2826_v59 = vpop.eup %2825  ;;  %2831 = vpow2.f32 %v874_v58 }
 0x426   : > { %v994_v60 = vpop.xlane.xlu1 %993  ;;  %v748_v61 = vsel %vm607_vm3, %v2826_v59, 0.0 }
 0x427   : > { %v998_v62 = vsub.f32 %v990_v32, %v994_v60  ;;  %749 = vadd.xlane.f32.xlu1 %v748_v61 }
 0x428   : > { %v997_v63 = vpop.xlane.xlu0 %996 }
 0x429   : > { %v2828_v1 = vpop.eup %2827  ;;  %v1000_v2 = vmul.f32 1.442695, %v998_v62  ;;  %v999_v3 = vsub.f32 %v991_v34, %v997_v63 }
 0x42a   : > { %v751_v5 = vsel %vm607_vm3, %v2828_v1, 0.0  ;;  %v754_v10 = vpack.c.bf16 %v2828_v1, %v2826_v59  ;;  %v884_v13 = vpop.permute.xlu1 %883 }
 0x42b   : > { %2833 = vpow2.f32 %v1000_v2  ;;  %v1002_v6 = vmul.f32 1.442695, %v999_v3  ;;  %752 = vadd.xlane.f32.xlu0 %v751_v5 }
 0x42c   : > { %v756_v7 = vpop.permute.xlu0 %755 }
 0x42d   : > { %v2830_v8 = vpop.eup %2829  ;;  %2835 = vpow2.f32 %v1002_v6  ;;  %2564 = vmatpush3.bf16.msra.mxu0 %v756_v7 }
 0x42e   : > { %v876_v9 = vsel %vm607_vm3, %v2830_v8, 0.0  ;;  %2575 = vmatprep.subr.bf16.mxu0 %v2957_v15  ;;  %v1012_v21 = vpop.permute.xlu1 %1011 }
 0x42f   : > { %v2832_v12 = vpop.eup %2831  ;;  %877 = vadd.xlane.f32.xlu0 %v876_v9 }
 0x430   : > { %2566 = vmatmul.mubr.msk.bf16.vlgmr.msra.gmra.mrb[8].mxu0 %vm607_vm3, %v754_v10  ;;  %v879_v14 = vsel %vm607_vm3, %v2832_v12, 0.0  ;;  %v882_v19 = vpack.c.bf16 %v2832_v12, %v2830_v8 }
 0x431   : > { %2576 = vmatpush3.bf16.msra.mxu0 %v884_v13  ;;  %2577 = vmatprep.mubr.msk.bf16.mxu0 %vm2958_vm1, %v2957_v15 }
 0x432   : > { %2587 = vmatprep.subr.bf16.mxu0 %v2957_v15 }
 0x433   : > { %880 = vadd.xlane.f32.xlu0 %v879_v14 }
 0x435   : > { %v2834_v16 = vpop.eup %2833 }
 0x436   : > { %v1004_v18 = vsel %vm607_vm3, %v2834_v16, 0.0 }
 0x437   : > { %v2836_v20 = vpop.eup %2835  ;;  %1005 = vadd.xlane.f32.xlu1 %v1004_v18 }
 0x438   : > { %2578 = vmatmul.mubr.msk.bf16.vlgmr.msra.gmra.mrb[12].mxu0 %vm607_vm3, %v882_v19  ;;  %v1007_v22 = vsel %vm607_vm3, %v2836_v20, 0.0  ;;  %v1010_v26 = vpack.c.bf16 %v2836_v20, %v2834_v16 }
 0x439   : > { %2588 = vmatpush3.bf16.msra.mxu0 %v1012_v21  ;;  %1008 = vadd.xlane.f32.xlu0 %v1007_v22 }
 0x43a   : > { %2589 = vmatprep.mubr.msk.bf16.mxu0 %vm2958_vm1, %v2957_v15  ;;  %2601 = vmatprep.subr.bf16.mxu0 %v2957_v15 }
 0x43b   : > { %621 = vadd.xlane.f32.xlu1 %v620_v23 }
 0x43d   : > { %624 = vadd.xlane.f32.xlu0 %v623_v24 }
 0x440   : > { %2590 = vmatmul.mubr.msk.bf16.vlgmr.msra.gmra.mrb[16].mxu0 %vm607_vm3, %v1010_v26 }
 0x441   : > { %2603 = vmatprep.mubr.msk.bf16.mxu0 %vm2958_vm1, %v2957_v15 }
 0x4b4   : > { %v750_v27 = vpop.xlane.xlu1 %749 }
 0x4b5   : > { %2837 = vrcp.f32 %v750_v27 }
 0x4b8   : > { %v753_v30 = vpop.xlane.xlu0 %752 }
 0x4b9   : > { %2839 = vrcp.f32 %v753_v30 }
 0x4bc   : > { %v878_v34 = vpop.xlane.xlu0 %877 }
 0x4bd   : > { %2841 = vrcp.f32 %v878_v34 }
 0x4bf   : > { %v2838_v36 = vpop.eup %2837 }
 0x4c0   : > { %v881_v35 = vpop.xlane.xlu0 %880 }
 0x4c1   : > { %2843 = vrcp.f32 %v881_v35 }
 0x4c3   : > { %v2840_v41 = vpop.eup %2839 }
 0x4c4   : > { %v1006_v43 = vpop.xlane.xlu1 %1005 }
 0x4c5   : > { %2845 = vrcp.f32 %v1006_v43 }
 0x4c6   : > { %v1009_v46 = vpop.xlane.xlu0 %1008 }
 0x4c7   : > { %v2842_v47 = vpop.eup %2841  ;;  %2847 = vrcp.f32 %v1009_v46 }
 0x4c8   : > { %v622_v1 = vpop.xlane.xlu1 %621 }
 0x4c9   : > { %2849 = vrcp.f32 %v622_v1 }
 0x4ca   : > { %v625_v2 = vpop.xlane.xlu0 %624 }
 0x4cb   : > { %v2844_v53 = vpop.eup %2843  ;;  %2851 = vrcp.f32 %v625_v2 }
 0x4cf   : > { %v2846_v55 = vpop.eup %2845 }
 0x4d1   : > { %v2848_v60 = vpop.eup %2847 }
 0x4d3   : > { %v2850_v7 = vpop.eup %2849 }
 0x4d5   : > { %v2852_v8 = vpop.eup %2851 }
 0x4f5   : > { %v667_v28 = vpop.f32.mrb[4].mxu0 }
 0x4f6   : > { %v2555_v31 = vpop.f32.mrb[5].mxu0  ;;  %v675_v10 = vmul.f32 %v2850_v7, %v667_v28 }
 0x4f7   : > { %v670_v32 = vpop.f32.mrb[6].mxu0 }
 0x4f8   : > { %v2556_v33 = vpop.f32.mrb[7].mxu0  ;;  %v677_v12 = vmul.f32 %v2852_v8, %v670_v32 }
 0x503   : > { %v795_v38 = vpop.f32.mrb[8].mxu0 }
 0x504   : > { %v803_v39 = vmul.f32 %v2838_v36, %v795_v38  ;;  %v2567_v40 = vpop.f32.mrb[9].mxu0 }
 0x505   : > { %v798_v42 = vpop.f32.mrb[10].mxu0 }
 0x506   : > { %v805_v44 = vmul.f32 %v2840_v41, %v798_v42  ;;  %1064 = vrot.lane.b32.xlu1 %v803_v39, %s3578_s29  ;;  %v2568_v45 = vpop.f32.mrb[11].mxu0 }
 0x508   : > { %1066 = vrot.lane.b32.xlu0 %v805_v44, %s3578_s29  ;;  %s2972_s29 = smov 24  }
 0x50b   : > { %v923_v48 = vpop.f32.mrb[12].mxu0 }
 0x50c   : > { %v931_v49 = vmul.f32 %v2842_v47, %v923_v48  ;;  %v2579_v50 = vpop.f32.mrb[13].mxu0 }
 0x50d   : > { %v926_v51 = vpop.f32.mrb[14].mxu0 }
 0x50e   : > { %1072 = vrot.lane.b32.xlu1 %v931_v49, %s2971_s12  ;;  %v2580_v37 = vpop.f32.mrb[15].mxu0  ;;  %v933_v54 = vmul.f32 %v2844_v53, %v926_v51 }
 0x512   : > { %1074 = vrot.lane.b32.xlu1 %v933_v54, %s2971_s12 }
 0x513   : > { %v1051_v57 = vpop.f32.mrb[16].mxu0 }
 0x514   : > { %v1059_v58 = vmul.f32 %v2846_v55, %v1051_v57  ;;  %v2591_v59 = vpop.f32.mrb[17].mxu0 }
 0x515   : > { %v1054_v61 = vpop.f32.mrb[18].mxu0 }
 0x516   : > { %v1061_v62 = vmul.f32 %v2848_v60, %v1054_v61  ;;  %1080 = vrot.lane.b32.xlu1 %v1059_v58, %s2972_s29  ;;  %v2592_v63 = vpop.f32.mrb[19].mxu0 }
 0x518   : > { %1082 = vrot.lane.b32.xlu0 %v1061_v62, %s2972_s29 }
 0x578   : > { %v1065_v3 = vpop.permute.xlu1 %1064 }
 0x579   : > { %v1086_v14 = vsel %vm553_vm2, %v675_v10, %v1065_v3 }
 0x57a   : > { %v1067_v9 = vpop.permute.xlu0 %1066 }
 0x57b   : > { %v1087_v16 = vsel %vm553_vm2, %v677_v12, %v1067_v9 }
 0x580   : > { %v1073_v5 = vpop.permute.xlu1 %1072 }
 0x581   : > { %v1088_v18 = vsel %vm607_vm3, %v1086_v14, %v1073_v5 }
 0x584   : > { %v1075_v6 = vpop.permute.xlu1 %1074 }
 0x585   : > { %v1089_v19 = vsel %vm607_vm3, %v1087_v16, %v1075_v6 }
 0x588   : > { %v1081_v13 = vpop.permute.xlu1 %1080 }
 0x589   : > { %v3261_v21 = vsel %vm1090_vm4, %v1088_v18, %v1081_v13 }
 0x58a   : > { %v1083_v20 = vpop.permute.xlu0 %1082 }
 0x58b   : > { %v3264_v22 = vsel %vm1090_vm4, %v1089_v19, %v1083_v20 }
 0x58c   : > { %v1093_v23 = vpack.c.bf16 %v3264_v22, %v3261_v21 }
 0x58e   : > { %2598 = vmatmul.mubr.msk.bf16.vlgmr.msra.gmra.mrb[16].mxu1 %vm446_vm0, %v1093_v23 }
 0x58f   : > { %2609 = vmatprep.mubr.msk.bf16.mxu1 %vm2958_vm1, %v2957_v15 }
 0x661   : > { %v1131_v24 = vpop.f32.mrb[16].mxu1 }
 0x662   : > { %v2599_v26 = vpop.f32.mrb[17].mxu1 }
 0x663   : > { %v1134_v27 = vpop.f32.mrb[18].mxu1 }
 0x664   : > { %v3271_v28 = vpack.c.bf16 %v1134_v27, %v1131_v24  ;;  %v2600_v30 = vpop.f32.mrb[19].mxu1 }
 0x666   : > { %1265 = vrot.lane.b32.xlu0 %v3271_v28, %s2959_s13  ;;  %1140 = vrot.lane.b32.xlu1 %v3271_v28, %s2960_s14  ;;  %v1146_v31 = vsel %vm553_vm2, %v3271_v28, 0  ;;  %s3588_s13 = smov 40   ;;  %s3589_s14 = smov 96  }
 0x667   : > { %2602 = vmatpush3.bf16.xpose.msra.mxu0 %v1146_v31 }
 0x668   : > { %2613 = vmatprep.subr.bf16.mxu0 %v2957_v15 }
 0x66a   : > { %1390 = vrot.lane.b32.xlu0 %v3271_v28, %s2963_s22  ;;  %1263 = vrot.lane.b32.xlu1 %v3271_v28, %s2961_s15  ;;  %s3590_s15 = smov 72  }
 0x66e   : > { %1515 = vrot.lane.b32.xlu0 %v3271_v28, %s2965_s25  ;;  %1388 = vrot.lane.b32.xlu1 %v3271_v28, %s2962_s16  ;;  %s3591_s16 = smov 8   ;;  %s2466_s25 = sshll.u32 %s3056_s21, 8 }
 0x66f   : > { %s3515_s2 = scalar_lea.hbm %s3574_s11, %s2466_s25 }
 0x672   : > { %1513 = vrot.lane.b32.xlu1 %v3271_v28, %s3588_s13  ;;  %s2899_s13 = scalar_lea.vmem %s2898_s1, 512 }
 0x6d8   : > { %v1266_v32 = vpop.permute.xlu0 %1265  ;;  %v1141_v33 = vpop.permute.xlu1 %1140 }
 0x6d9   : > { %v1271_v34 = vsel %vm553_vm2, %v1266_v32, 0  ;;  %2604 = vmatmul.mubr.msk.bf16.vlgmr.msra.gmra.mrb[20].mxu0 %vm553_vm2, %v1141_v33 }
 0x6da   : > { %2614 = vmatpush3.bf16.xpose.msra.mxu0 %v1271_v34  ;;  %2615 = vmatprep.mubr.msk.bf16.mxu0 %vm2958_vm1, %v2957_v15 }
 0x6db   : > { %2625 = vmatprep.subr.bf16.mxu0 %v2957_v15 }
 0x6dc   : > { %v1391_v35 = vpop.permute.xlu0 %1390  ;;  %v1264_v36 = vpop.permute.xlu1 %1263 }
 0x6dd   : > { %v1396_v38 = vsel %vm553_vm2, %v1391_v35, 0 }
 0x6e0   : > { %v1516_v39 = vpop.permute.xlu0 %1515  ;;  %v1389_v40 = vpop.permute.xlu1 %1388 }
 0x6e1   : > { %2616 = vmatmul.mubr.msk.bf16.vlgmr.msra.gmra.mrb[24].mxu0 %vm553_vm2, %v1264_v36  ;;  %v1521_v41 = vsel %vm553_vm2, %v1516_v39, 0 }
 0x6e2   : > { %2626 = vmatpush3.bf16.xpose.msra.mxu0 %v1396_v38  ;;  %2627 = vmatprep.mubr.msk.bf16.mxu0 %vm2958_vm1, %v2957_v15 }
 0x6e3   : > { %2637 = vmatprep.subr.bf16.mxu0 %v2957_v15 }
 0x6e4   : > { %v1514_v42 = vpop.permute.xlu1 %1513 }
 0x6e9   : > { %2628 = vmatmul.mubr.msk.bf16.vlgmr.msra.gmra.mrb[28].mxu0 %vm553_vm2, %v1389_v40 }
 0x6ea   : > { %2638 = vmatpush3.bf16.xpose.msra.mxu0 %v1521_v41  ;;  %2639 = vmatprep.mubr.msk.bf16.mxu0 %vm2958_vm1, %v2957_v15 }
 0x6eb   : > { %2649 = vmatprep.subr.bf16.mxu0 %v2957_v15 }
 0x6f1   : > { %2640 = vmatmul.mubr.msk.bf16.vlgmr.msra.gmra.mrb[32].mxu0 %vm553_vm2, %v1514_v42 }
 0x6f2   : > { %2651 = vmatprep.mubr.msk.bf16.mxu0 %vm2958_vm1, %v2957_v15 }
 0x7ac   : > { %v1182_v43 = vpop.f32.mrb[20].mxu0 }
 0x7ad   : > { %v1189_v44 = vmul.f32 0.35355338, %v1182_v43  ;;  %v2605_v45 = vpop.f32.mrb[21].mxu0 }
 0x7ae   : > { %v1185_v46 = vpop.f32.mrb[22].mxu0 }
 0x7af   : > { %v1190_v47 = vmul.f32 0.35355338, %v1185_v46  ;;  %v2606_v48 = vpop.f32.mrb[23].mxu0  ;;  %v1191_v49 = vadd.f32 %v1189_v44, %v3168_v52 }
 0x7b1   : > { %v1193_v50 = vsel %vm607_vm3, %v1191_v49, -inf  ;;  %v1192_v51 = vadd.f32 %v1190_v47, %v3173_v56 }
 0x7b2   : > { %1194 = vmax.xlane.f32.xlu0 %v1193_v50 }
 0x7b3   : > { %v1196_v37 = vsel %vm607_vm3, %v1192_v51, -inf }
 0x7b4   : > { %1197 = vmax.xlane.f32.xlu1 %v1196_v37  ;;  %v1307_v53 = vpop.f32.mrb[24].mxu0 }
 0x7b5   : > { %v1314_v54 = vmul.f32 0.35355338, %v1307_v53  ;;  %v2617_v55 = vpop.f32.mrb[25].mxu0 }
 0x7b6   : > { %v1310_v57 = vpop.f32.mrb[26].mxu0 }
 0x7b7   : > { %v1315_v58 = vmul.f32 0.35355338, %v1310_v57  ;;  %v2618_v59 = vpop.f32.mrb[27].mxu0  ;;  %v1316_v60 = vadd.f32 %v3182_v0, %v1314_v54 }
 0x7b9   : > { %v1318_v61 = vsel %vm607_vm3, %v1316_v60, -inf  ;;  %v1317_v52 = vadd.f32 %v3187_v4, %v1315_v58 }
 0x7ba   : > { %1319 = vmax.xlane.f32.xlu0 %v1318_v61 }
 0x7bb   : > { %v1321_v1 = vsel %vm607_vm3, %v1317_v52, -inf }
 0x7bc   : > { %v1432_v62 = vpop.f32.mrb[28].mxu0 }
 0x7bd   : > { %v1439_v63 = vmul.f32 0.35355338, %v1432_v62  ;;  %v2629_v56 = vpop.f32.mrb[29].mxu0 }
 0x7be   : > { %1322 = vmax.xlane.f32.xlu0 %v1321_v1  ;;  %v1435_v2 = vpop.f32.mrb[30].mxu0 }
 0x7bf   : > { %v1440_v3 = vmul.f32 0.35355338, %v1435_v2  ;;  %v2630_v5 = vpop.f32.mrb[31].mxu0  ;;  %v1441_v6 = vadd.f32 %v3195_v11, %v1439_v63 }
 0x7c1   : > { %v1443_v7 = vsel %vm607_vm3, %v1441_v6, -inf  ;;  %v1442_v0 = vadd.f32 %v3201_v17, %v1440_v3 }
 0x7c2   : > { %1444 = vmax.xlane.f32.xlu0 %v1443_v7 }
 0x7c3   : > { %v1446_v8 = vsel %vm607_vm3, %v1442_v0, -inf }
 0x7c4   : > { %1447 = vmax.xlane.f32.xlu1 %v1446_v8  ;;  %v1557_v4 = vpop.f32.mrb[32].mxu0 }
 0x7c5   : > { %v1564_v9 = vmul.f32 0.35355338, %v1557_v4  ;;  %v2641_v10 = vpop.f32.mrb[33].mxu0 }
 0x7c6   : > { %v1560_v12 = vpop.f32.mrb[34].mxu0 }
 0x7c7   : > { %v2642_v13 = vpop.f32.mrb[35].mxu0  ;;  %v1566_v14 = vadd.f32 %v3210_v25, %v1564_v9  ;;  %v1565_v11 = vmul.f32 0.35355338, %v1560_v12 }
 0x7c9   : > { %v1568_v16 = vsel %vm607_vm3, %v1566_v14, -inf  ;;  %v3329_v17 = vadd.f32 %v3215_v29, %v1565_v11 }
 0x7ca   : > { %1569 = vmax.xlane.f32.xlu0 %v1568_v16 }
 0x7cb   : > { %v1571_v18 = vsel %vm607_vm3, %v3329_v17, -inf }
 0x7d5   : > { %1337 = vrot.lane.b32.xlu1 %v3271_v28, %s2969_s24  ;;  %s377_s24 = sand.u32 1, %s2947_s18  }
 0x7d6   : > { %s3521_s21 = scalar_lea.sflag [#allocation3], %s377_s24 }
 0x7d9   : > { %1462 = vrot.lane.b32.xlu1 %v3271_v28, %s2967_s30 }
 0x7e0   : > { %1212 = vrot.lane.b32.xlu0 %v3271_v28, %s3589_s14 }
 0x7fd   : > { %1572 = vmax.xlane.f32.xlu1 %v1571_v18 }
 0x80e   : > { %1587 = vrot.lane.b32.xlu1 %v3271_v28, %s3590_s15 }
 0x83f   : > { %v1195_v25 = vpop.xlane.xlu0 %1194 }
 0x840   : > { %v1199_v26 = vsub.f32 %v1191_v49, %v1195_v25 }
 0x841   : > { %v1198_v19 = vpop.xlane.xlu1 %1197 }
 0x842   : > { %v1200_v20 = vsub.f32 %v1192_v51, %v1198_v19  ;;  %v1201_v29 = vmul.f32 1.442695, %v1199_v26 }
 0x844   : > { %v1203_v30 = vmul.f32 1.442695, %v1200_v20 }
 0x847   : > { %v1320_v23 = vpop.xlane.xlu0 %1319 }
 0x848   : > { %v1324_v24 = vsub.f32 %v1316_v60, %v1320_v23 }
 0x84a   : > { %v1326_v27 = vmul.f32 1.442695, %v1324_v24 }
 0x84b   : > { %v1323_v31 = vpop.xlane.xlu0 %1322 }
 0x84c   : > { %2853 = vpow2.f32 %v1326_v27  ;;  %v1325_v32 = vsub.f32 %v1317_v52, %v1323_v31 }
 0x84d   : > { %2855 = vpow2.f32 %v1203_v30 }
 0x84e   : > { %v1328_v33 = vmul.f32 1.442695, %v1325_v32 }
 0x84f   : > { %v1445_v34 = vpop.xlane.xlu0 %1444 }
 0x850   : > { %2857 = vpow2.f32 %v1328_v33  ;;  %v1449_v35 = vsub.f32 %v1441_v6, %v1445_v34 }
 0x851   : > { %v1448_v36 = vpop.xlane.xlu1 %1447  ;;  %2859 = vpow2.f32 %v1201_v29 }
 0x852   : > { %v1451_v28 = vmul.f32 1.442695, %v1449_v35  ;;  %v1450_v38 = vsub.f32 %v1442_v0, %v1448_v36 }
 0x854   : > { %2861 = vpow2.f32 %v1451_v28  ;;  %v1453_v39 = vmul.f32 1.442695, %v1450_v38 }
 0x855   : > { %v1338_v37 = vpop.permute.xlu1 %1337 }
 0x856   : > { %v2854_v40 = vpop.eup %2853  ;;  %2863 = vpow2.f32 %v1453_v39 }
 0x857   : > { %v1570_v41 = vpop.xlane.xlu0 %1569  ;;  %v1330_v42 = vsel %vm607_vm3, %v2854_v40, 0.0  ;;  %v2856_v44 = vpop.eup %2855 }
 0x858   : > { %v1574_v43 = vsub.f32 %v1566_v14, %v1570_v41  ;;  %1331 = vadd.xlane.f32.xlu0 %v1330_v42  ;;  %v1208_v6 = vsel %vm607_vm3, %v2856_v44, 0.0 }
 0x859   : > { %v1463_v59 = vpop.permute.xlu1 %1462 }
 0x85a   : > { %v2858_v45 = vpop.eup %2857  ;;  %v1576_v46 = vmul.f32 1.442695, %v1574_v43 }
 0x85b   : > { %v1213_v47 = vpop.permute.xlu0 %1212  ;;  %v1333_v48 = vsel %vm607_vm3, %v2858_v45, 0.0  ;;  %v2860_v49 = vpop.eup %2859  ;;  %v1336_v57 = vpack.c.bf16 %v2858_v45, %v2854_v40 }
 0x85c   : > { %2865 = vpow2.f32 %v1576_v46  ;;  %2608 = vmatpush3.bf16.msra.mxu1 %v1213_v47  ;;  %1334 = vadd.xlane.f32.xlu1 %v1333_v48  ;;  %v1211_v50 = vpack.c.bf16 %v2856_v44, %v2860_v49  ;;  %v1205_v61 = vsel %vm607_vm3, %v2860_v49, 0.0 }
 0x85d   : > { %2619 = vmatprep.subr.bf16.mxu1 %v2957_v15 }
 0x85e   : > { %v2862_v51 = vpop.eup %2861 }
 0x85f   : > { %2610 = vmatmul.mubr.msk.bf16.vlgmr.msra.gmra.mrb[20].mxu1 %vm607_vm3, %v1211_v50  ;;  %v1455_v53 = vsel %vm607_vm3, %v2862_v51, 0.0 }
 0x860   : > { %v2864_v54 = vpop.eup %2863  ;;  %1456 = vadd.xlane.f32.xlu0 %v1455_v53  ;;  %2620 = vmatpush3.bf16.msra.mxu1 %v1338_v37 }
 0x861   : > { %2621 = vmatprep.mubr.msk.bf16.mxu1 %vm2958_vm1, %v2957_v15  ;;  %2631 = vmatprep.subr.bf16.mxu1 %v2957_v15  ;;  %v1458_v55 = vsel %vm607_vm3, %v2864_v54, 0.0  ;;  %v1461_v52 = vpack.c.bf16 %v2864_v54, %v2862_v51 }
 0x864   : > { %1459 = vadd.xlane.f32.xlu0 %v1458_v55 }
 0x866   : > { %v2866_v58 = vpop.eup %2865 }
 0x867   : > { %2622 = vmatmul.mubr.msk.bf16.vlgmr.msra.gmra.mrb[24].mxu1 %vm607_vm3, %v1336_v57  ;;  %v1580_v60 = vsel %vm607_vm3, %v2866_v58, 0.0 }
 0x868   : > { %2632 = vmatpush3.bf16.msra.mxu1 %v1463_v59  ;;  %1581 = vadd.xlane.f32.xlu0 %v1580_v60 }
 0x869   : > { %2633 = vmatprep.mubr.msk.bf16.mxu1 %vm2958_vm1, %v2957_v15  ;;  %2643 = vmatprep.subr.bf16.mxu1 %v2957_v15 }
 0x86c   : > { %1206 = vadd.xlane.f32.xlu0 %v1205_v61 }
 0x86f   : > { %2634 = vmatmul.mubr.msk.bf16.vlgmr.msra.gmra.mrb[28].mxu1 %vm607_vm3, %v1461_v52 }
 0x870   : > { %2645 = vmatprep.mubr.msk.bf16.mxu1 %vm2958_vm1, %v2957_v15 }
 0x88a   : > { %v1573_v62 = vpop.xlane.xlu1 %1572 }
 0x88b   : > { %v1575_v63 = vsub.f32 %v3329_v17, %v1573_v62 }
 0x88d   : > { %v1578_v56 = vmul.f32 1.442695, %v1575_v63 }
 0x88e   : > { %v1588_v1 = vpop.permute.xlu1 %1587 }
 0x88f   : > { %2867 = vpow2.f32 %v1578_v56  ;;  %2644 = vmatpush3.bf16.msra.mxu1 %v1588_v1 }
 0x890   : > { %2655 = vmatprep.subr.bf16.mxu1 %v2957_v15 }
 0x899   : > { %v2868_v2 = vpop.eup %2867 }
 0x89a   : > { %v1583_v3 = vsel %vm607_vm3, %v2868_v2, 0.0  ;;  %v1586_v5 = vpack.c.bf16 %v2868_v2, %v2866_v58 }
 0x89b   : > { %1584 = vadd.xlane.f32.xlu1 %v1583_v3 }
 0x89c   : > { %2646 = vmatmul.mubr.msk.bf16.vlgmr.msra.gmra.mrb[32].mxu1 %vm607_vm3, %v1586_v5 }
 0x89d   : > { %2657 = vmatprep.mubr.msk.bf16.mxu1 %vm2958_vm1, %v2957_v15 }
 0x89f   : > { %1209 = vadd.xlane.f32.xlu1 %v1208_v6 }
 0x8e5   : > { %v1332_v7 = vpop.xlane.xlu0 %1331 }
 0x8e6   : > { %2869 = vrcp.f32 %v1332_v7 }
 0x8e9   : > { %v1335_v0 = vpop.xlane.xlu1 %1334 }
 0x8ea   : > { %2871 = vrcp.f32 %v1335_v0 }
 0x8ed   : > { %v1457_v4 = vpop.xlane.xlu0 %1456 }
 0x8ee   : > { %2873 = vrcp.f32 %v1457_v4 }
 0x8f0   : > { %v2870_v14 = vpop.eup %2869 }
 0x8f1   : > { %v1460_v13 = vpop.xlane.xlu0 %1459 }
 0x8f2   : > { %2875 = vrcp.f32 %v1460_v13 }
 0x8f4   : > { %v2872_v18 = vpop.eup %2871 }
 0x8f5   : > { %v1582_v33 = vpop.xlane.xlu0 %1581 }
 0x8f6   : > { %2877 = vrcp.f32 %v1582_v33 }
 0x8f8   : > { %v2874_v23 = vpop.eup %2873 }
 0x8f9   : > { %v1207_v43 = vpop.xlane.xlu0 %1206 }
 0x8fc   : > { %v2876_v32 = vpop.eup %2875 }
 0x900   : > { %v2878_v35 = vpop.eup %2877 }
 0x928   : > { %v1585_v34 = vpop.xlane.xlu1 %1584 }
 0x929   : > { %2879 = vrcp.f32 %v1585_v34 }
 0x92a   : > { %2881 = vrcp.f32 %v1207_v43  ;;  %v2800_v43 = vld [vmem:[%s3566_s3 + $0x18] sm:$0xff]  }
 0x92c   : > { %v1210_v44 = vpop.xlane.xlu1 %1209 }
 0x92d   : > { %2883 = vrcp.f32 %v1210_v44  ;;  %v2801_v44 = vld [vmem:[%s3566_s3] sm:$0xff]  }
 0x932   : > { %v1252_v8 = vpop.f32.mrb[20].mxu1 }
 0x933   : > { %v2611_v9 = vpop.f32.mrb[21].mxu1  ;;  %v2880_v39 = vpop.eup %2879 }
 0x934   : > { %v1255_v10 = vpop.f32.mrb[22].mxu1  ;;  %v2882_v47 = vpop.eup %2881 }
 0x935   : > { %v2612_v12 = vpop.f32.mrb[23].mxu1  ;;  %v1260_v50 = vmul.f32 %v2882_v47, %v1252_v8 }
 0x937   : > { %v2884_v48 = vpop.eup %2883 }
 0x938   : > { %v1262_v37 = vmul.f32 %v2884_v48, %v1255_v10 }
 0x93a   : > { %v1377_v16 = vpop.f32.mrb[24].mxu1 }
 0x93b   : > { %v1385_v11 = vmul.f32 %v2870_v14, %v1377_v16  ;;  %v2623_v17 = vpop.f32.mrb[25].mxu1  ;;  %v428_v16 = vlaneseq }
 0x93c   : > { %v1380_v25 = vpop.f32.mrb[26].mxu1 }
 0x93d   : > { %v1387_v19 = vmul.f32 %v2872_v18, %v1380_v25  ;;  %v2624_v20 = vpop.f32.mrb[27].mxu1  ;;  %1640 = vrot.lane.b32.xlu0 %v1385_v11, %s3591_s16  ;;  %v429_v11 = vshrl.u32 %v428_v16, 7  ;;  %v432_v17 = vand.u32 127, %v428_v16 }
 0x93f   : > { %1642 = vrot.lane.b32.xlu1 %v1387_v19, %s3591_s16  ;;  %v430_v25 = vadd.s32 8, %v429_v11  ;;  %v433_v20 = vadd.s32 1, %v432_v17 }
 0x941   : > { %vm434_vm5 = vcmp.eq.s32.totalorder %v429_v11, %v433_v20  ;;  %vm435_vm6 = vcmp.eq.s32.totalorder %v430_v25, %v433_v20 }
 0x942   : > { %v1502_v24 = vpop.f32.mrb[28].mxu1  ;;  %v436_v33 = vsel %vm434_vm5, 1.0, %v2957_v15  ;;  %v437_v34 = vsel %vm435_vm6, 1.0, %v2957_v15 }
 0x943   : > { %v1510_v26 = vmul.f32 %v2874_v23, %v1502_v24  ;;  %v2635_v27 = vpop.f32.mrb[29].mxu1  ;;  %v2428_v23 = vld [vmem:[%s3570_s7] ss:$0 sm:$0xff]  ;;  %v439_v24 = vadd.s32 1, %v429_v11 }
 0x944   : > { %v1505_v30 = vpop.f32.mrb[30].mxu1 }
 0x945   : > { %v2636_v31 = vpop.f32.mrb[31].mxu1  ;;  %1648 = vrot.lane.b32.xlu1 %v1510_v26, %s2971_s12  ;;  %v1512_v29 = vmul.f32 %v2876_v32, %v1505_v30  ;;  %v440_v26 = vadd.s32 1, %v430_v25  ;;  %v2429_v32 = vld [vmem:[%s3571_s8] ss:$0 sm:$0xff]  ;;  %vm441_vm7 = vcmp.eq.s32.totalorder %v432_v17, %v439_v24 }
 0x947   : > { %vm442_vm8 = vcmp.eq.s32.totalorder %v432_v17, %v440_v26 }
 0x949   : > { %1650 = vrot.lane.b32.xlu1 %v1512_v29, %s2971_s12 }
 0x96f   : > { %v1627_v36 = vpop.f32.mrb[32].mxu1 }
 0x970   : > { %v1635_v28 = vmul.f32 %v2878_v35, %v1627_v36  ;;  %v2647_v38 = vpop.f32.mrb[33].mxu1 }
 0x971   : > { %v1630_v40 = vpop.f32.mrb[34].mxu1  ;;  %v444_v38 = vsel %vm442_vm8, 1.0, %v2957_v15 }
 0x972   : > { %v1637_v41 = vmul.f32 %v2880_v39, %v1630_v40  ;;  %1656 = vrot.lane.b32.xlu0 %v1635_v28, %s2972_s29  ;;  %v2648_v42 = vpop.f32.mrb[35].mxu1  ;;  %v443_v28 = vsel %vm441_vm7, 1.0, %v2957_v15  ;;  %v438_v40 = vpack.c.bf16 %v437_v34, %v436_v33 }
 0x973   : > { %v2799_v42 = vld [vmem:[%s3566_s3 + $0x10] sm:$0xff]  }
 0x974   : > { %1658 = vrot.lane.b32.xlu1 %v1637_v41, %s2972_s29  ;;  %v3394_v41 = vpack.c.bf16 %v444_v38, %v443_v28  ;;  %s2397_s29 = sshll.u32 %s377_s24, 4 }
 0x975   : > { %s379_s30 = scalar_lea.vmem [#allocation2], %s2397_s29 }
 0x976   : > { %s2331_s12 = sshll.u32 %s379_s30, 4  ;;  %s3518_s12 = int_to_ptr.vmem [resolvable:$true] %s2331_s12 }
 0x977   : > { %s2893_s29 = scalar_lea.vmem %s3518_s12, 256  ;;  %p2900_p0 = scmp.lt.s32.totalorder %s3518_s12, %s2898_s1 }
 0x978   : > { %p2894_p11 = scmp.ne.s32.totalorder %s3518_s12, %s2893_s29  ;;  %p2901_p1 = scmp.lt.s32.totalorder %s2899_s13, %s2893_s29 }
 0x97a   : > { %p2895_p12 = pnand %p2894_p11, %p3073_p5  ;;  %p2902_p2 = por %p2901_p1, %p2900_p0 }
 0x97c   : > { %p2896_p13 = pneg %p2895_p12 }
 0x97e   : > { %p2903_p3 = pnand %p2902_p2, %p2896_p13 }
 0x9af   : > { %v1641_v49 = vpop.permute.xlu0 %1640 }
 0x9b0   : > { %v1662_v53 = vsel %vm553_vm2, %v1260_v50, %v1641_v49 }
 0x9b1   : > { %v1643_v45 = vpop.permute.xlu1 %1642 }
 0x9b2   : > { %v1663_v57 = vsel %vm553_vm2, %v1262_v37, %v1643_v45  ;;  %v2802_v45 = vld [vmem:[%s3566_s3 + $0x8] sm:$0xff]  }
 0x9b7   : > { %v1649_v46 = vpop.permute.xlu1 %1648 }
 0x9b8   : > { %v1664_v54 = vsel %vm607_vm3, %v1662_v53, %v1649_v46 }
 0x9bb   : > { %v1651_v51 = vpop.permute.xlu1 %1650 }
 0x9bc   : > { %v1665_v59 = vsel %vm607_vm3, %v1663_v57, %v1651_v51  ;;  %v2803_v51 = vld [vmem:[%s3566_s3 + $0x20] sm:$0xff]  }
 0x9e4   : > { %v1657_v55 = vpop.permute.xlu0 %1656 }
 0x9e5   : > { %v1666_v58 = vsel %vm1090_vm4, %v1664_v54, %v1657_v55 }
 0x9e6   : > { %v1659_v60 = vpop.permute.xlu1 %1658  ;;  %v1668_v61 = vadd.f32 %v1666_v58, %v3261_v21  ;;  %v2804_v58 = vld [vmem:[%s3566_s3 + $0x28] sm:$0xff]  }
 0x9e7   : > { %v1667_v52 = vsel %vm1090_vm4, %v1665_v59, %v1659_v60  ;;  %v2809_v59 = vld [vmem:[%s3567_s4] sm:$0xff]   ;;  %v2810_v60 = vld [vmem:[%s3567_s4 + $0x8] sm:$0xff]  }
 0x9e8   : > { %v1670_v62 = vsel %vm446_vm0, %v1668_v61, 0.0  ;;  %v1669_v63 = vadd.f32 %v1667_v52, %v3264_v22 }
 0x9e9   : > { %1671 = vadd.xlane.f32.xlu0 %v1670_v62 }
 0x9ea   : > { %v1673_v56 = vsel %vm446_vm0, %v1669_v63, 0.0 }
 0x9eb   : > { %1674 = vadd.xlane.f32.xlu1 %v1673_v56 }
 0xa76   : > { %v1672_v1 = vpop.xlane.xlu0 %1671 }
 0xa77   : > { %v1676_v2 = vmul.f32 0.03125, %v1672_v1 }
 0xa78   : > { %v1675_v3 = vpop.xlane.xlu1 %1674 }
 0xa79   : > { %v1678_v5 = vsub.f32 %v1668_v61, %v1676_v2  ;;  %v1677_v6 = vmul.f32 0.03125, %v1675_v3  ;;  %v2811_v61 = vld [vmem:[%s3567_s4 + $0x10] sm:$0xff]  }
 0xa7b   : > { %v1679_v7 = vsub.f32 %v1669_v63, %v1677_v6  ;;  %v1680_v0 = vmul.f32 %v1678_v5, %v1678_v5  ;;  %v2806_v6 = vld [vmem:[%s3567_s4 + $0x28] sm:$0xff]  }
 0xa7d   : > { %v1682_v8 = vsel %vm446_vm0, %v1680_v0, 0.0  ;;  %v1681_v21 = vmul.f32 %v1679_v7, %v1679_v7  ;;  %v2808_v0 = vld [vmem:[%s3567_s4 + $0x38] sm:$0xff]  }
 0xa7e   : > { %1683 = vadd.xlane.f32.xlu0 %v1682_v8  ;;  %v2812_v8 = vld [vmem:[%s3567_s4 + $0x40] sm:$0xff]  }
 0xa7f   : > { %v1685_v4 = vsel %vm446_vm0, %v1681_v21, 0.0  ;;  %v2813_v21 = vld [vmem:[%s3567_s4 + $0x18] sm:$0xff]  }
 0xa82   : > { %1686 = vadd.xlane.f32.xlu0 %v1685_v4  ;;  %v2814_v4 = vld [vmem:[%s3567_s4 + $0x48] sm:$0xff]  }
 0xb0b   : > { %v1684_v9 = vpop.xlane.xlu0 %1683 }
 0xb0c   : > { %v1688_v22 = vmul.f32 0.03125, %v1684_v9  ;;  %v2815_v9 = vld [vmem:[%s3567_s4 + $0x50] sm:$0xff]  }
 0xb0e   : > { %v1690_v10 = vadd.f32 1e-05, %v1688_v22  ;;  %v2816_v22 = vld [vmem:[%s3567_s4 + $0x58] sm:$0xff]  }
 0xb0f   : > { %v1687_v12 = vpop.xlane.xlu0 %1686 }
 0xb10   : > { %2885 = vrsqrt.f32 %v1690_v10  ;;  %v1689_v13 = vmul.f32 0.03125, %v1687_v12 }
 0xb12   : > { %v1691_v14 = vadd.f32 1e-05, %v1689_v13 }
 0xb14   : > { %2887 = vrsqrt.f32 %v1691_v14 }
 0xb1a   : > { %v2886_v18 = vpop.eup %2885 }
 0xb1b   : > { %v1694_v19 = vmul.f32 %v2886_v18, %v1678_v5  ;;  %v2805_v5 = vld [vmem:[%s3567_s4 + $0x20] sm:$0xff]  }
 0xb1d   : > { %v1703_v31 = vmul.f32 %v2428_v23, %v1694_v19 }
 0xb1e   : > { %v2888_v27 = vpop.eup %2887 }
 0xb1f   : > { %v1695_v30 = vmul.f32 %v2888_v27, %v1679_v7  ;;  %v3386_v35 = vadd.f32 %v2429_v32, %v1703_v31  ;;  %v2807_v7 = vld [vmem:[%s3567_s4 + $0x30] sm:$0xff]  }
 0xb21   : > { %v1704_v29 = vmul.f32 %v2428_v23, %v1695_v30 }
 0xb23   : > { %v3388_v36 = vadd.f32 %v2429_v32, %v1704_v29 }
 0xb25   : > { %v1714_v39 = vpack.c.bf16 %v3388_v36, %v3386_v35 }
 0xb27   : > { %2650 = vmatpush3.bf16.msra.mxu0 %v1714_v39  ;;  %2656 = vmatpush3.bf16.msra.mxu1 %v1714_v39 }
 0xb28   : > { %2661 = vmatprep.subr.bf16.mxu0 %v2957_v15  ;;  %2685 = vmatprep.subr.bf16.mxu1 %v2957_v15 }
 0xb2a   : > { %2652 = vmatmul.mubr.msk.bf16.vlgmr.msra.gmra.mrb[36].mxu0 %vm607_vm3, %v438_v40  ;;  %2658 = vmatmul.mubr.msk.bf16.vlgmr.msra.gmra.mrb[36].mxu1 %vm607_vm3, %v3394_v41 }
 0xb2b   : > { %2662 = vmatpush3.bf16.msra.mxu0 %v2799_v42  ;;  %2665 = vmatprep.mubr.msk.bf16.mxu0 %vm2958_vm1, %v2957_v15 }
 0xb2c   : > { %2663 = vmatprep.subr.bf16.mxu0 %v2957_v15  ;;  %2687 = vmatprep.mubr.msk.bf16.mxu1 %vm2958_vm1, %v2957_v15 }
 0xb2f   : > { %2664 = vmatpush3.bf16.msra.mxu0 %v2800_v43 }
 0xb30   : > { %2669 = vmatprep.subr.bf16.mxu0 %v2957_v15 }
 0xb32   : > { %2666 = vmatmul.mubr.msk.bf16.vlgmr.msra.gmra.mrb[40].mxu0 %vm446_vm0, %v1714_v39 }
 0xb33   : > { %2670 = vmatpush3.bf16.msra.mxu0 %v2801_v44  ;;  %2673 = vmatprep.mubr.msk.bf16.mxu0 %vm2958_vm1, %v2957_v15 }
 0xb34   : > { %2671 = vmatprep.subr.bf16.mxu0 %v2957_v15 }
 0xb37   : > { %2672 = vmatpush3.bf16.msra.mxu0 %v2802_v45 }
 0xb38   : > { %2677 = vmatprep.subr.bf16.mxu0 %v2957_v15 }
 0xbfd   : > { %v1752_v46 = vpop.f32.mrb[36].mxu0  ;;  %v1797_v47 = vpop.f32.mrb[36].mxu1 }
 0xbfe   : > { %v2653_v48 = vpop.f32.mrb[37].mxu0  ;;  %v2659_v49 = vpop.f32.mrb[37].mxu1 }
 0xbff   : > { %v1755_v50 = vpop.f32.mrb[38].mxu0  ;;  %v1800_v37 = vpop.f32.mrb[38].mxu1 }
 0xc00   : > { %v1759_v53 = vpack.c.bf16 %v1755_v50, %v1752_v46  ;;  %v2654_v54 = vpop.f32.mrb[39].mxu0  ;;  %v1804_v55 = vpack.c.bf16 %v1800_v37, %v1797_v47  ;;  %v2660_v57 = vpop.f32.mrb[39].mxu1 }
 0xc02   : > { %2674 = vmatmul.mubr.msk.bf16.vlgmr.msra.gmra.mrb[40].mxu0 %vm446_vm0, %v1759_v53 }
 0xc03   : > { %2678 = vmatpush3.bf16.msra.mxu0 %v2803_v51  ;;  %2681 = vmatprep.mubr.msk.bf16.mxu0 %vm2958_vm1, %v2957_v15 }
 0xc04   : > { %2679 = vmatprep.subr.bf16.mxu0 %v2957_v15 }
 0xc07   : > { %2680 = vmatpush3.bf16.msra.mxu0 %v2804_v58 }
 0xc08   : > { %2709 = vmatprep.subr.bf16.mxu0 %v2957_v15 }
 0xc0e   : > { %2682 = vmatmul.mubr.msk.bf16.vlgmr.msra.gmra.mrb[40].mxu0 %vm446_vm0, %v1804_v55 }
 0xc0f   : > { %2717 = vmatprep.mubr.msk.bf16.mxu0 %vm2958_vm1, %v2957_v15  ;;  %2710 = vmatpush3.bf16.msra.mxu0 %v2809_v59 }
 0xc10   : > { %2711 = vmatprep.subr.bf16.mxu0 %v2957_v15 }
 0xc13   : > { %2712 = vmatpush3.bf16.msra.mxu0 %v2810_v60 }
 0xc14   : > { %2713 = vmatprep.subr.bf16.mxu0 %v2957_v15 }
 0xc17   : > { %2714 = vmatpush3.bf16.msra.mxu0 %v2811_v61  ;;  %v2458_v61 = vld [vmem:[%s3572_s9] ss:$0 sm:$0xff] }
 0xc18   : > { %2715 = vmatprep.subr.bf16.mxu0 %v2957_v15 }
 0xc1b   : > { %2716 = vmatpush3.bf16.msra.mxu0 %v2813_v21 }
 0xce1   : > { %v1966_v52 = vpop.f32.mrb[40].mxu0 }
 0xce2   : > { %v2683_v62 = vpop.f32.mrb[41].mxu0  ;;  %v1975_v56 = vmax.f32 %v1966_v52, 0.0 }
 0xce3   : > { %v1969_v63 = vpop.f32.mrb[42].mxu0 }
 0xce4   : > { %v1976_v1 = vmax.f32 %v1969_v63, 0.0  ;;  %v2684_v2 = vpop.f32.mrb[43].mxu0  ;;  %v2459_v63 = vld [vmem:[%s3573_s10] ss:$0 sm:$0xff] }
 0xce6   : > { %v1977_v3 = vpack.c.bf16 %v1976_v1, %v1975_v56 }
 0xce8   : > { %2686 = vmatpush3.bf16.msra.mxu1 %v1977_v3 }
 0xce9   : > { %2691 = vmatprep.subr.bf16.mxu1 %v2957_v15 }
 0xceb   : > { %2688 = vmatmul.mubr.msk.bf16.vlgmr.msra.gmra.mrb[40].mxu1 %vm607_vm3, %v438_v40 }
 0xcec   : > { %2692 = vmatpush3.bf16.msra.mxu1 %v1977_v3  ;;  %2693 = vmatprep.mubr.msk.bf16.mxu1 %vm2958_vm1, %v2957_v15 }
 0xced   : > { %2697 = vmatprep.subr.bf16.mxu1 %v2957_v15 }
 0xcf3   : > { %2694 = vmatmul.mubr.msk.bf16.vlgmr.msra.gmra.mrb[44].mxu1 %vm607_vm3, %v3394_v41 }
 0xcf4   : > { %2698 = vmatpush3.bf16.msra.mxu1 %v2805_v5  ;;  %2705 = vmatprep.mubr.msk.bf16.mxu1 %vm2958_vm1, %v2957_v15 }
 0xcf5   : > { %2699 = vmatprep.subr.bf16.mxu1 %v2957_v15 }
 0xcf8   : > { %2700 = vmatpush3.bf16.msra.mxu1 %v2806_v6 }
 0xcf9   : > { %2701 = vmatprep.subr.bf16.mxu1 %v2957_v15 }
 0xcfc   : > { %2702 = vmatpush3.bf16.msra.mxu1 %v2807_v7 }
 0xcfd   : > { %2703 = vmatprep.subr.bf16.mxu1 %v2957_v15 }
 0xd00   : > { %2704 = vmatpush3.bf16.msra.mxu1 %v2808_v0 }
 0xd01   : > { %2721 = vmatprep.subr.bf16.mxu1 %v2957_v15 }
 0xd03   : > { %2706 = vmatmul.mubr.msk.bf16.vlgmr.msra.gmra.mrb[48].mxu1 %vm2086_vm9, %v1977_v3 }
 0xd04   : > { %2722 = vmatpush3.bf16.msra.mxu1 %v2812_v8  ;;  %2729 = vmatprep.mubr.msk.bf16.mxu1 %vm2958_vm1, %v2957_v15 }
 0xd05   : > { %2723 = vmatprep.subr.bf16.mxu1 %v2957_v15 }
 0xd08   : > { %2724 = vmatpush3.bf16.msra.mxu1 %v2814_v4 }
 0xd09   : > { %2725 = vmatprep.subr.bf16.mxu1 %v2957_v15 }
 0xd0c   : > { %2726 = vmatpush3.bf16.msra.mxu1 %v2815_v9 }
 0xd0d   : > { %2727 = vmatprep.subr.bf16.mxu1 %v2957_v15 }
 0xd10   : > { %2728 = vmatpush3.bf16.msra.mxu1 %v2816_v22 }
 0xdbe   : > { %v2012_v10 = vpop.f32.mrb[40].mxu1 }
 0xdbf   : > { %v2689_v12 = vpop.f32.mrb[41].mxu1 }
 0xdc0   : > { %v2015_v13 = vpop.f32.mrb[42].mxu1 }
 0xdc1   : > { %v2019_v14 = vpack.c.bf16 %v2015_v13, %v2012_v10  ;;  %v2690_v16 = vpop.f32.mrb[43].mxu1 }
 0xdc3   : > { %2718 = vmatmul.mubr.msk.bf16.vlgmr.msra.gmra.mrb[44].mxu0 %vm2086_vm9, %v2019_v14 }
 0xdc6   : > { %v2054_v11 = vpop.f32.mrb[44].mxu1 }
 0xdc7   : > { %v2695_v17 = vpop.f32.mrb[45].mxu1 }
 0xdc8   : > { %v2057_v18 = vpop.f32.mrb[46].mxu1 }
 0xdc9   : > { %v2061_v25 = vpack.c.bf16 %v2057_v18, %v2054_v11  ;;  %v2696_v19 = vpop.f32.mrb[47].mxu1 }
 0xdcb   : > { %2730 = vmatmul.mubr.msk.bf16.vlgmr.msra.gmra.mrb[52].mxu1 %vm2086_vm9, %v2061_v25 }
 0xdd6   : > { %v2124_v15 = vpop.f32.mrb[48].mxu1 }
 0xdd7   : > { %v2707_v20 = vpop.f32.mrb[49].mxu1 }
 0xdd8   : > { %v2127_v23 = vpop.f32.mrb[50].mxu1 }
 0xdd9   : > { %v2708_v24 = vpop.f32.mrb[51].mxu1 }
 0xe96   : > { %v2192_v26 = vpop.f32.mrb[44].mxu0 }
 0xe97   : > { %v2193_v27 = vadd.f32 %v2192_v26, %v2124_v15  ;;  %v2719_v30 = vpop.f32.mrb[45].mxu0 }
 0xe98   : > { %v2195_v31 = vpop.f32.mrb[46].mxu0 }
 0xe99   : > { %v2196_v32 = vadd.f32 %v2195_v31, %v2127_v23  ;;  %v2720_v29 = vpop.f32.mrb[47].mxu0 }
 0xe9e   : > { %v2260_v33 = vpop.f32.mrb[52].mxu1 }
 0xe9f   : > { %v2267_v34 = vadd.f32 %v2260_v33, %v2193_v27  ;;  %v2731_v28 = vpop.f32.mrb[53].mxu1 }
 0xea0   : > { %v2263_v38 = vpop.f32.mrb[54].mxu1 }
 0xea1   : > { %v2268_v39 = vadd.f32 %v2263_v38, %v2196_v32  ;;  %v2732_v40 = vpop.f32.mrb[55].mxu1  ;;  %v2269_v41 = vadd.f32 %v2267_v34, %v3386_v35 }
 0xea3   : > { %v2271_v42 = vsel %vm446_vm0, %v2269_v41, 0.0  ;;  %v2270_v43 = vadd.f32 %v2268_v39, %v3388_v36 }
 0xea4   : > { %2272 = vadd.xlane.f32.xlu0 %v2271_v42 }
 0xea5   : > { %v2274_v44 = vsel %vm446_vm0, %v2270_v43, 0.0 }
 0xea6   : > { %2275 = vadd.xlane.f32.xlu1 %v2274_v44 }
 0xf31   : > { %v2273_v45 = vpop.xlane.xlu0 %2272 }
 0xf32   : > { %v2277_v46 = vmul.f32 0.03125, %v2273_v45 }
 0xf33   : > { %v2276_v47 = vpop.xlane.xlu1 %2275 }
 0xf34   : > { %v2279_v48 = vsub.f32 %v2269_v41, %v2277_v46  ;;  %v2278_v49 = vmul.f32 0.03125, %v2276_v47 }
 0xf36   : > { %v2280_v50 = vsub.f32 %v2270_v43, %v2278_v49  ;;  %v2281_v51 = vmul.f32 %v2279_v48, %v2279_v48 }
 0xf38   : > { %v2283_v37 = vsel %vm446_vm0, %v2281_v51, 0.0  ;;  %v2282_v53 = vmul.f32 %v2280_v50, %v2280_v50 }
 0xf39   : > { %2284 = vadd.xlane.f32.xlu0 %v2283_v37 }
 0xf3a   : > { %v2286_v35 = vsel %vm446_vm0, %v2282_v53, 0.0 }
 0xf3b   : > { %2287 = vadd.xlane.f32.xlu1 %v2286_v35 }
 0xfc6   : > { %v2285_v36 = vpop.xlane.xlu0 %2284 }
 0xfc7   : > { %v2289_v54 = vmul.f32 0.03125, %v2285_v36 }
 0xfc8   : > { %v2288_v55 = vpop.xlane.xlu1 %2287 }
 0xfc9   : > { %v2291_v57 = vadd.f32 1e-05, %v2289_v54  ;;  %v2290_v58 = vmul.f32 0.03125, %v2288_v55 }
 0xfcb   : > { %2889 = vrsqrt.f32 %v2291_v57  ;;  %v2292_v59 = vadd.f32 1e-05, %v2290_v58 }
 0xfcd   : > { %2891 = vrsqrt.f32 %v2292_v59 }
 0xfd5   : > { %v2890_v60 = vpop.eup %2889 }
 0xfd6   : > { %v2295_v52 = vmul.f32 %v2890_v60, %v2279_v48 }
 0xfd7   : > { %v2892_v62 = vpop.eup %2891 }
 0xfd8   : > { %v2304_v56 = vmul.f32 %v2458_v61, %v2295_v52  ;;  %v2296_v1 = vmul.f32 %v2892_v62, %v2280_v50 }
 0xfda   : > { %v2313_v2 = vadd.f32 %v2459_v63, %v2304_v56  ;;  %v2305_v3 = vmul.f32 %v2458_v61, %v2296_v1 }
 0xfdc   : > { %v2314_v5 = vadd.f32 %v2459_v63, %v2305_v3  ;;  %2315 = vst.msk [vmem:[%s379_s30] sm:$0xff] %vm446_vm0, %v2313_v2 }
 0xfde   : > { %2316 = vst.msk [vmem:[%s379_s30 + $0x8] sm:$0xff] %vm446_vm0, %v2314_v5 }
 0xfdf   : > { %2906 = shalt.err (!%p2903_p3)
}
 0xfe0   : > { %s2907_s24 = scalar_lea.hbm %s3515_s2, 256  ;;  %s2911_s22 = scalar_lea.hbm %s3574_s11, 512 }
 0xfe1   : > { %p2908_p4 = scmp.ne.s32.totalorder %s3515_s2, %s2907_s24  ;;  %p2912_p9 = scmp.lt.u32.totalorder %s3515_s2, %s3574_s11 }
 0xfe2   : > { %p2913_p10 = scmp.lt.u32.totalorder %s2911_s22, %s2907_s24  ;;  %p2915_p12 = scmp.lt.u32.totalorder %s2907_s24, %s3515_s2 }
 0xfe3   : > { %p2909_p7 = pnand %p2908_p4, %p3073_p5 }
 0xfe4   : > { %p2914_p11 = por %p2913_p10, %p2912_p9 }
 0xfe5   : > { %p2910_p8 = pneg %p2909_p7 }
 0xfe6   : > { %p2916_p13 = por %p2915_p12, %p2914_p11 }
 0xfe8   : > { %p2917_p0 = pnand %p2916_p13, %p2910_p8 }
 0xfea   : > { %2920 = shalt.err (!%p2917_p0)
}
 0xfeb   : > { %s2974_s29 = smov 128  }
 0xfec   : > { %2741 = dma.vmem_to_hbm [thread:$0]  (%p3073_p5), %s3518_s12, 256, %s3515_s2, %s3521_s21, %s2974_s29, %s2974_s29, %s3591_s16  }
 0xfed PF: > { %p2747_p1 = scmp.ge.s32.totalorder %s2955_s20, 2  ;;  %s2346_s0 = sand.u32 1, %s2943_s17  }
 0xfee   : > { %s2347_s1 = scalar_lea.sflag [#allocation3], %s2346_s0 }
 0xfef   : > { %p2744_p2 = pnand %p2747_p1, %p3077_p6 }
 0xff1   : > { %2938 = dma.done.wait (!%p2744_p2), %s2347_s1, 256  }
 0xff2   : > { %2940 = vsyncadd (!%p2744_p2), %s2347_s1, 4294967040  ;;  %p21_p3 = scmp.ge.s32.totalorder %s3060_s23, 4   ;;  %s3592_s17 = smov %s2947_s18 }
 0xff3   : > { %s3593_s18 = smov %s2951_s19  ;;  %s3594_s19 = smov %s3071_s26 }
 0xff4   : > { %s3595_s20 = smov %s3060_s23  ;;  %23 = sbr.rel (!%p21_p3) target bundleno = 7 (0x7), region = 102 }
 0xffb   :  { %2352 = vsyncpa [#allocation3], 1 }
 0xffc   :  { %2354 = vsyncpa [#allocation3 + $0x1], 1 }

</bundles_post_ra>
